<compile_context>
chip_gen: v7x
topology: tpu7x:2x2x1
jax: 0.10.0
libtpu: 0.0.40
codegen_flags: <defaults>
</compile_context>

<pallas_src>
import functools

import jax
import jax.numpy as jnp
from jax import lax
from jax.experimental import pallas as pl
from jax.experimental.pallas import tpu as pltpu


# ------------------------------ Pallas kernel ------------------------------ #

def _dwconv3x3_kernel(x_ref, w_ref, b_ref, o_ref, xp_ref):
    # x_ref : (1, H, W, Cblk)      unpadded NHWC input tile (caller dtype)
    # w_ref : (9, Cblk)            depthwise taps, tap-major (t = 3*ki + kj)
    # b_ref : (1, Cblk)            bias
    # o_ref : (1, H, W, Cblk)      output tile (lane-dense channel block)
    # xp_ref: (1, H+2, W+2, Cblk)  f32 VMEM scratch: zero halo + copied centre
    _, H, W, C = o_ref.shape

    # Build the zero-halo'd tile in VMEM (replaces the old HBM jnp.pad pass).
    xp_ref[...] = jnp.zeros_like(xp_ref)
    xp_ref[:, pl.ds(1, H), pl.ds(1, W), :] = x_ref[...].astype(xp_ref.dtype)

    def tap(t):  # per-channel tap, broadcast over (H, W)
        return w_ref[pl.ds(t, 1), :].astype(jnp.float32).reshape(1, 1, 1, C)

    acc = None
    for kj in range(3):                                   # 3 column groups
        # Row taps: slices along H (outer dim) are aligned -> no realignment.
        p = xp_ref[:, pl.ds(0, H), :, :] * tap(0 + kj)    # (1, H, W+2, C)
        p = p + xp_ref[:, pl.ds(1, H), :, :] * tap(3 + kj)
        p = p + xp_ref[:, pl.ds(2, H), :, :] * tap(6 + kj)
        # Single W (sublane) shift per column group (kj=0 is even aligned).
        shifted = p[:, :, kj:kj + W, :]                   # (1, H, W, C)
        acc = shifted if acc is None else acc + shifted

    acc = acc + b_ref[...].astype(jnp.float32).reshape(1, 1, 1, C)
    o_ref[...] = acc.astype(o_ref.dtype)                  # single final store


# ------------------------------- tiling logic ------------------------------- #

def _vmem_budgets():
    """Returns (tile-picker working-set budget, Mosaic scoped-vmem limit)."""
    phys = 64 * 1024 * 1024                  # conservative default (v7x-sized)
    try:
        phys = int(pltpu.get_tpu_info().vmem_capacity_bytes)
    except Exception:
        pass
    budget = min(phys // 3, 48 * 1024 * 1024)        # ~21 MiB v7x, ~43 MiB v5e/v6e
    limit = min((3 * phys) // 4, 96 * 1024 * 1024)   # 48 MiB v7x, 96 MiB v5e/v6e
    return budget, limit


def _pick_channel_block(C, B, H, W, itemsize, vmem_budget, min_steps=8):
    """Largest multiple-of-128 divisor of C whose working set fits VMEM,
    preferring enough grid steps to keep both TensorCores + pipeline busy."""

    def footprint(cb):
        io = 2 * H * W * cb * itemsize * 2          # in + out, double-buffered
        halo = (H + 2) * (W + 2) * cb * 4           # padded f32 scratch
        temps = 4 * H * (W + 2) * cb * 4            # acc / partials / realignment copies
        return io + halo + temps

    divisors = [cb for cb in range(128, C + 1, 128) if C % cb == 0]
    fitting = [cb for cb in divisors if footprint(cb) <= vmem_budget]
    if not fitting:
        # TODO(synk): add halo'd spatial (H) tiling via manual async copies when
        # even a 128-channel block exceeds the VMEM budget (very large H*W).
        fitting = [divisors[0]]
    enough_steps = [cb for cb in fitting if B * (C // cb) >= min_steps]
    return max(enough_steps) if enough_steps else min(fitting)


# --------------------------------- wrapper ---------------------------------- #

def pack_dwconv_params(w, b):
    """PyTorch depthwise weight (C, 1, 3, 3), bias (C,) -> (9, C), (1, C)."""
    C = w.shape[0]
    w_taps = jnp.transpose(w.reshape(C, 9), (1, 0))   # tap-major, channels last
    return w_taps, b.reshape(1, C)


def dwconv(x, w_taps, bias, H, W):
    """x: (B, N, C) with N == H*W; returns (B, N, C)."""
    B, N, C = x.shape
    assert N == H * W
    # transpose(1,2).view(B,C,H,W) in NCHW == reshape(B,H,W,C) in NHWC: same data,
    # so there are no layout transposes around the kernel.
    x_nhwc = x.reshape(B, H, W, C)

    # Lane-dense channels: pad C to a multiple of 128 so every output store is
    # an unmasked vst. No-op for the module's usual dim=512 / test's 256.
    Cp = ((C + 127) // 128) * 128
    if Cp != C:
        pad_c = Cp - C
        x_nhwc = jnp.pad(x_nhwc, ((0, 0), (0, 0), (0, 0), (0, pad_c)))
        w_taps = jnp.pad(w_taps, ((0, 0), (0, pad_c)))
        bias = jnp.pad(bias, ((0, 0), (0, pad_c)))

    budget, vmem_limit = _vmem_budgets()
    Cblk = _pick_channel_block(Cp, B, H, W, x.dtype.itemsize, budget)
    grid = (Cp // Cblk, B)   # batch innermost: weight/bias tiles stay resident

    out = pl.pallas_call(
        _dwconv3x3_kernel,
        out_shape=jax.ShapeDtypeStruct((B, H, W, Cp), x.dtype),
        grid=grid,
        in_specs=[
            pl.BlockSpec((1, H, W, Cblk), lambda ci, bi: (bi, 0, 0, ci)),
            pl.BlockSpec((9, Cblk), lambda ci, bi: (0, ci)),
            pl.BlockSpec((1, Cblk), lambda ci, bi: (0, ci)),
        ],
        out_specs=pl.BlockSpec((1, H, W, Cblk), lambda ci, bi: (bi, 0, 0, ci)),
        scratch_shapes=[pltpu.VMEM((1, H + 2, W + 2, Cblk), jnp.float32)],
        compiler_params=pltpu.CompilerParams(
            dimension_semantics=("parallel", "parallel"),
            vmem_limit_bytes=int(vmem_limit),
        ),
        cost_estimate=pl.CostEstimate(
            flops=2 * 9 * B * H * W * Cp,
            transcendentals=0,
            bytes_accessed=x.dtype.itemsize * (2 * B * H * W * Cp + 10 * Cp),
        ),
    )(x_nhwc, w_taps, bias)

    if Cp != C:
        out = out[..., :C]
    # flatten(2).transpose(1,2) in NCHW == plain NHWC reshape: no transpose needed.
    return out.reshape(B, N, C)


# ------------------------------ reference ----------------------------------- #

def dwconv_reference(x, w, b, H, W):
    B, N, C = x.shape
    xi = x.reshape(B, H, W, C)
    wf = jnp.transpose(w, (2, 3, 1, 0))          # (3, 3, 1, C) HWIO
    out = lax.conv_general_dilated(
        xi, wf, window_strides=(1, 1), padding=((1, 1), (1, 1)),
        dimension_numbers=("NHWC", "HWIO", "NHWC"),
        feature_group_count=C)
    return (out + b[None, None, None, :]).reshape(B, N, C)


# --------------------------------- main ------------------------------------- #

if __name__ == "__main__":
    # Small stand-in for the module's default dim=512; C kept a multiple of 128
    # so the channel (lane) dimension is dense.
    B, H, W, C = 2, 16, 16, 256
    N = H * W

    key = jax.random.PRNGKey(0)
    kx, kw, kb = jax.random.split(key, 3)
    x = jax.random.normal(kx, (B, N, C), jnp.float32)
    w = 0.1 * jax.random.normal(kw, (C, 1, 3, 3), jnp.float32)   # torch dw layout
    b = 0.1 * jax.random.normal(kb, (C,), jnp.float32)

    w_taps, bias = pack_dwconv_params(w, b)                      # hoisted once
    fwd = jax.jit(functools.partial(dwconv, H=H, W=W))
    out = fwd(x, w_taps, bias)
    jax.block_until_ready(out)

    assert out.shape == (B, N, C), out.shape
    assert bool(jnp.all(jnp.isfinite(out)))
    ref = dwconv_reference(x, w, b, H, W)
    err = float(jnp.max(jnp.abs(out - ref)))
    assert bool(jnp.allclose(out, ref, atol=1e-4, rtol=1e-4)), err
    print("KERNEL_OK")
</pallas_src>

<mosaic_0001>
module attributes {stable_mosaic.version = 11 : i64} {
  func.func @_dwconv3x3_kernel(%arg0: i32, %arg1: i32, %arg2: memref<1x16x16x128xf32, #tpu.memory_space<vmem>>, %arg3: memref<9x128xf32, #tpu.memory_space<vmem>>, %arg4: memref<1x128xf32, #tpu.memory_space<vmem>>, %arg5: memref<1x16x16x128xf32, #tpu.memory_space<vmem>>, %arg6: memref<1x18x18x128xf32, #tpu.memory_space<vmem>>) attributes {dimension_semantics = [#tpu.dimension_semantics<parallel>, #tpu.dimension_semantics<parallel>], iteration_bounds = array<i64: 2, 2>, scalar_prefetch = 0 : i64, scratch_operands = 1 : i64, tpu.core_type = #tpu.core_type<tc>, window_params = [{transform_indices = @transform_0, window_bounds = array<i64: 1, 16, 16, 128>}, {transform_indices = @transform_1, window_bounds = array<i64: 9, 128>}, {transform_indices = @transform_2, window_bounds = array<i64: 1, 128>}, {transform_indices = @transform_3, window_bounds = array<i64: 1, 16, 16, 128>}]} {
    %cst = arith.constant 0.000000e+00 : f32
    %0 = vector.broadcast %cst : f32 to vector<1x18x18x128xf32>
    %c0 = arith.constant 0 : index
    %c0_0 = arith.constant 0 : index
    %c0_1 = arith.constant 0 : index
    %c0_2 = arith.constant 0 : index
    %1 = vector.load %arg6[%c0, %c0_0, %c0_1, %c0_2] : memref<1x18x18x128xf32, #tpu.memory_space<vmem>>, vector<1x18x18x128xf32>
    tpu.vector_store %arg6[%c0, %c0_0, %c0_1, %c0_2], %0 {strides = array<i32>} : memref<1x18x18x128xf32, #tpu.memory_space<vmem>>, vector<1x18x18x128xf32>,
    %c0_3 = arith.constant 0 : index
    %c0_4 = arith.constant 0 : index
    %c0_5 = arith.constant 0 : index
    %c0_6 = arith.constant 0 : index
    %2 = vector.load %arg2[%c0_3, %c0_4, %c0_5, %c0_6] : memref<1x16x16x128xf32, #tpu.memory_space<vmem>>, vector<1x16x16x128xf32>
    %c0_7 = arith.constant 0 : index
    %c1 = arith.constant 1 : index
    %c1_8 = arith.constant 1 : index
    %c0_9 = arith.constant 0 : index
    %3 = vector.load %arg6[%c0_7, %c1, %c1_8, %c0_9] : memref<1x18x18x128xf32, #tpu.memory_space<vmem>>, vector<1x16x16x128xf32>
    tpu.vector_store %arg6[%c0_7, %c1, %c1_8, %c0_9], %2 {strides = array<i32>} : memref<1x18x18x128xf32, #tpu.memory_space<vmem>>, vector<1x16x16x128xf32>,
    %c0_10 = arith.constant 0 : index
    %c0_11 = arith.constant 0 : index
    %c0_12 = arith.constant 0 : index
    %c0_13 = arith.constant 0 : index
    %4 = vector.load %arg6[%c0_10, %c0_11, %c0_12, %c0_13] : memref<1x18x18x128xf32, #tpu.memory_space<vmem>>, vector<1x16x18x128xf32>
    %c0_14 = arith.constant 0 : index
    %c0_15 = arith.constant 0 : index
    %5 = vector.load %arg3[%c0_14, %c0_15] : memref<9x128xf32, #tpu.memory_space<vmem>>, vector<1x128xf32>
    %6 = vector.shape_cast %5 : vector<1x128xf32> to vector<1x1x1x128xf32>
    %7 = vector.broadcast %6 : vector<1x1x1x128xf32> to vector<1x16x18x128xf32>
    %8 = arith.mulf %4, %7 : vector<1x16x18x128xf32>
    %c0_16 = arith.constant 0 : index
    %c1_17 = arith.constant 1 : index
    %c0_18 = arith.constant 0 : index
    %c0_19 = arith.constant 0 : index
    %9 = vector.load %arg6[%c0_16, %c1_17, %c0_18, %c0_19] : memref<1x18x18x128xf32, #tpu.memory_space<vmem>>, vector<1x16x18x128xf32>
    %c3 = arith.constant 3 : index
    %c0_20 = arith.constant 0 : index
    %10 = vector.load %arg3[%c3, %c0_20] : memref<9x128xf32, #tpu.memory_space<vmem>>, vector<1x128xf32>
    %11 = vector.shape_cast %10 : vector<1x128xf32> to vector<1x1x1x128xf32>
    %12 = vector.broadcast %11 : vector<1x1x1x128xf32> to vector<1x16x18x128xf32>
    %13 = arith.mulf %9, %12 : vector<1x16x18x128xf32>
    %14 = arith.addf %8, %13 : vector<1x16x18x128xf32>
    %c0_21 = arith.constant 0 : index
    %c2 = arith.constant 2 : index
    %c0_22 = arith.constant 0 : index
    %c0_23 = arith.constant 0 : index
    %15 = vector.load %arg6[%c0_21, %c2, %c0_22, %c0_23] : memref<1x18x18x128xf32, #tpu.memory_space<vmem>>, vector<1x16x18x128xf32>
    %c6 = arith.constant 6 : index
    %c0_24 = arith.constant 0 : index
    %16 = vector.load %arg3[%c6, %c0_24] : memref<9x128xf32, #tpu.memory_space<vmem>>, vector<1x128xf32>
    %17 = vector.shape_cast %16 : vector<1x128xf32> to vector<1x1x1x128xf32>
    %18 = vector.broadcast %17 : vector<1x1x1x128xf32> to vector<1x16x18x128xf32>
    %19 = arith.mulf %15, %18 : vector<1x16x18x128xf32>
    %20 = arith.addf %14, %19 : vector<1x16x18x128xf32>
    %21 = vector.extract_strided_slice %20 {offsets = [0, 0, 0, 0], sizes = [1, 16, 16, 128], strides = [1, 1, 1, 1]} : vector<1x16x18x128xf32> to vector<1x16x16x128xf32>
    %c0_25 = arith.constant 0 : index
    %c0_26 = arith.constant 0 : index
    %c0_27 = arith.constant 0 : index
    %c0_28 = arith.constant 0 : index
    %22 = vector.load %arg6[%c0_25, %c0_26, %c0_27, %c0_28] : memref<1x18x18x128xf32, #tpu.memory_space<vmem>>, vector<1x16x18x128xf32>
    %c1_29 = arith.constant 1 : index
    %c0_30 = arith.constant 0 : index
    %23 = vector.load %arg3[%c1_29, %c0_30] : memref<9x128xf32, #tpu.memory_space<vmem>>, vector<1x128xf32>
    %24 = vector.shape_cast %23 : vector<1x128xf32> to vector<1x1x1x128xf32>
    %25 = vector.broadcast %24 : vector<1x1x1x128xf32> to vector<1x16x18x128xf32>
    %26 = arith.mulf %22, %25 : vector<1x16x18x128xf32>
    %c0_31 = arith.constant 0 : index
    %c1_32 = arith.constant 1 : index
    %c0_33 = arith.constant 0 : index
    %c0_34 = arith.constant 0 : index
    %27 = vector.load %arg6[%c0_31, %c1_32, %c0_33, %c0_34] : memref<1x18x18x128xf32, #tpu.memory_space<vmem>>, vector<1x16x18x128xf32>
    %c4 = arith.constant 4 : index
    %c0_35 = arith.constant 0 : index
    %28 = vector.load %arg3[%c4, %c0_35] : memref<9x128xf32, #tpu.memory_space<vmem>>, vector<1x128xf32>
    %29 = vector.shape_cast %28 : vector<1x128xf32> to vector<1x1x1x128xf32>
    %30 = vector.broadcast %29 : vector<1x1x1x128xf32> to vector<1x16x18x128xf32>
    %31 = arith.mulf %27, %30 : vector<1x16x18x128xf32>
    %32 = arith.addf %26, %31 : vector<1x16x18x128xf32>
    %c0_36 = arith.constant 0 : index
    %c2_37 = arith.constant 2 : index
    %c0_38 = arith.constant 0 : index
    %c0_39 = arith.constant 0 : index
    %33 = vector.load %arg6[%c0_36, %c2_37, %c0_38, %c0_39] : memref<1x18x18x128xf32, #tpu.memory_space<vmem>>, vector<1x16x18x128xf32>
    %c7 = arith.constant 7 : index
    %c0_40 = arith.constant 0 : index
    %34 = vector.load %arg3[%c7, %c0_40] : memref<9x128xf32, #tpu.memory_space<vmem>>, vector<1x128xf32>
    %35 = vector.shape_cast %34 : vector<1x128xf32> to vector<1x1x1x128xf32>
    %36 = vector.broadcast %35 : vector<1x1x1x128xf32> to vector<1x16x18x128xf32>
    %37 = arith.mulf %33, %36 : vector<1x16x18x128xf32>
    %38 = arith.addf %32, %37 : vector<1x16x18x128xf32>
    %39 = vector.extract_strided_slice %38 {offsets = [0, 0, 1, 0], sizes = [1, 16, 16, 128], strides = [1, 1, 1, 1]} : vector<1x16x18x128xf32> to vector<1x16x16x128xf32>
    %40 = arith.addf %21, %39 : vector<1x16x16x128xf32>
    %c0_41 = arith.constant 0 : index
    %c0_42 = arith.constant 0 : index
    %c0_43 = arith.constant 0 : index
    %c0_44 = arith.constant 0 : index
    %41 = vector.load %arg6[%c0_41, %c0_42, %c0_43, %c0_44] : memref<1x18x18x128xf32, #tpu.memory_space<vmem>>, vector<1x16x18x128xf32>
    %c2_45 = arith.constant 2 : index
    %c0_46 = arith.constant 0 : index
    %42 = vector.load %arg3[%c2_45, %c0_46] : memref<9x128xf32, #tpu.memory_space<vmem>>, vector<1x128xf32>
    %43 = vector.shape_cast %42 : vector<1x128xf32> to vector<1x1x1x128xf32>
    %44 = vector.broadcast %43 : vector<1x1x1x128xf32> to vector<1x16x18x128xf32>
    %45 = arith.mulf %41, %44 : vector<1x16x18x128xf32>
    %c0_47 = arith.constant 0 : index
    %c1_48 = arith.constant 1 : index
    %c0_49 = arith.constant 0 : index
    %c0_50 = arith.constant 0 : index
    %46 = vector.load %arg6[%c0_47, %c1_48, %c0_49, %c0_50] : memref<1x18x18x128xf32, #tpu.memory_space<vmem>>, vector<1x16x18x128xf32>
    %c5 = arith.constant 5 : index
    %c0_51 = arith.constant 0 : index
    %47 = vector.load %arg3[%c5, %c0_51] : memref<9x128xf32, #tpu.memory_space<vmem>>, vector<1x128xf32>
    %48 = vector.shape_cast %47 : vector<1x128xf32> to vector<1x1x1x128xf32>
    %49 = vector.broadcast %48 : vector<1x1x1x128xf32> to vector<1x16x18x128xf32>
    %50 = arith.mulf %46, %49 : vector<1x16x18x128xf32>
    %51 = arith.addf %45, %50 : vector<1x16x18x128xf32>
    %c0_52 = arith.constant 0 : index
    %c2_53 = arith.constant 2 : index
    %c0_54 = arith.constant 0 : index
    %c0_55 = arith.constant 0 : index
    %52 = vector.load %arg6[%c0_52, %c2_53, %c0_54, %c0_55] : memref<1x18x18x128xf32, #tpu.memory_space<vmem>>, vector<1x16x18x128xf32>
    %c8 = arith.constant 8 : index
    %c0_56 = arith.constant 0 : index
    %53 = vector.load %arg3[%c8, %c0_56] : memref<9x128xf32, #tpu.memory_space<vmem>>, vector<1x128xf32>
    %54 = vector.shape_cast %53 : vector<1x128xf32> to vector<1x1x1x128xf32>
    %55 = vector.broadcast %54 : vector<1x1x1x128xf32> to vector<1x16x18x128xf32>
    %56 = arith.mulf %52, %55 : vector<1x16x18x128xf32>
    %57 = arith.addf %51, %56 : vector<1x16x18x128xf32>
    %58 = vector.extract_strided_slice %57 {offsets = [0, 0, 2, 0], sizes = [1, 16, 16, 128], strides = [1, 1, 1, 1]} : vector<1x16x18x128xf32> to vector<1x16x16x128xf32>
    %59 = arith.addf %40, %58 : vector<1x16x16x128xf32>
    %c0_57 = arith.constant 0 : index
    %c0_58 = arith.constant 0 : index
    %60 = vector.load %arg4[%c0_57, %c0_58] : memref<1x128xf32, #tpu.memory_space<vmem>>, vector<1x128xf32>
    %61 = vector.shape_cast %60 : vector<1x128xf32> to vector<1x1x1x128xf32>
    %62 = vector.broadcast %61 : vector<1x1x1x128xf32> to vector<1x16x16x128xf32>
    %63 = arith.addf %59, %62 : vector<1x16x16x128xf32>
    %c0_59 = arith.constant 0 : index
    %c0_60 = arith.constant 0 : index
    %c0_61 = arith.constant 0 : index
    %c0_62 = arith.constant 0 : index
    %64 = vector.load %arg5[%c0_59, %c0_60, %c0_61, %c0_62] : memref<1x16x16x128xf32, #tpu.memory_space<vmem>>, vector<1x16x16x128xf32>
    tpu.vector_store %arg5[%c0_59, %c0_60, %c0_61, %c0_62], %63 {strides = array<i32>} : memref<1x16x16x128xf32, #tpu.memory_space<vmem>>, vector<1x16x16x128xf32>,
    return
  }
  func.func @transform_0(%arg0: i32, %arg1: i32) -> (i32, i32, i32, i32) {
    %c0_i32 = arith.constant 0 : i32
    %c0_i32_0 = arith.constant 0 : i32
    %c0_i32_1 = arith.constant 0 : i32
    return %arg1, %c0_i32, %c0_i32_0, %arg0 : i32, i32, i32, i32
  }
  func.func @transform_1(%arg0: i32, %arg1: i32) -> (i32, i32) {
    %c0_i32 = arith.constant 0 : i32
    %c0_i32_0 = arith.constant 0 : i32
    return %c0_i32, %arg0 : i32, i32
  }
  func.func @transform_2(%arg0: i32, %arg1: i32) -> (i32, i32) {
    %c0_i32 = arith.constant 0 : i32
    %c0_i32_0 = arith.constant 0 : i32
    return %c0_i32, %arg0 : i32, i32
  }
  func.func @transform_3(%arg0: i32, %arg1: i32) -> (i32, i32, i32, i32) {
    %c0_i32 = arith.constant 0 : i32
    %c0_i32_0 = arith.constant 0 : i32
    %c0_i32_1 = arith.constant 0 : i32
    return %arg1, %c0_i32, %c0_i32_0, %arg0 : i32, i32, i32, i32
  }
}

</mosaic_0001>

<bundles_post_ra>
// kernel: dwconv.1
= control target key start
LH: loop header
LB: loop body
LE: loop exit
PB: predicated region body
PF: predicated region fallthrough
CT: control target
= control target key end

     0   :  { %s3448_s0 = inlined_call_operand.hbm [shape: f32[2,16,16,256], index: 0, kind: input, shape index: {}]   ;;  %s3449_s1 = inlined_call_operand.hbm [shape: f32[9,256], index: 1, kind: input, shape index: {}]   ;;  %s3450_s2 = inlined_call_operand.vmem [shape: f32[1,256], index: 2, kind: input, shape index: {}]   ;;  %s3451_s3 = inlined_call_operand.hbm [shape: f32[2,16,16,256], index: 3, kind: output, shape index: {}]  }
   0x1   :  { %3466 = sst [smem:[#allocation16_spill]] %s3451_s3 }
   0x2   :  { %8 = vsyncpa [#allocation4], 0 }
   0x3   :  { %10 = vsyncpa [#allocation4 + $0x1], 0 }
   0x4   :  { %11 = vsyncpa [#allocation7], 0 }
   0x5   :  { %13 = vsyncpa [#allocation7 + $0x1], 0 }
   0x6   :  { %14 = vsyncpa [#allocation5], 0 }
   0x7   :  { %16 = vsyncpa [#allocation5 + $0x1], 0  ;;  %s2171_s12 = smov 0   ;;  %s2173_s13 = smov 0  }
   0x8   :  { %s2175_s14 = smov 0   ;;  %s2177_s15 = smov 0  }
   0x9   :  { %s2179_s16 = smov 0   ;;  %s2181_s17 = smov 0  }
   0xa   :  { %s2183_s18 = smov 0   ;;  %s2185_s19 = smov 0  }
   0xb   :  { %s2187_s20 = smov 0   ;;  %s2189_s21 = smov 0  }
   0xc   :  { %s2191_s22 = smov 0  }
   0xd LB: > { %3467 = sst [smem:[#allocation12_spill]] %s2111_s15  ;;  %s1800_s23 = sadd.s32 4294967295, %s2139_s22   ;;  %s2139_s22 = sphi %s2191_s22, %s22_s22   ;;  %s2135_s21 = sphi %s2189_s21, %s3505_s21   ;;  %s2131_s20 = sphi %s2187_s20, %s3504_s20   ;;  %s2127_s19 = sphi %s2185_s19, %s3503_s19   ;;  %s2123_s18 = sphi %s2183_s18, %s3502_s18   ;;  %s2119_s17 = sphi %s2181_s17, %s3501_s17   ;;  %s2115_s16 = sphi %s2179_s16, %s3500_s16   ;;  %s2111_s15 = sphi %s2177_s15, %s3499_s15   ;;  %s2107_s14 = sphi %s2175_s14, %s3498_s14   ;;  %s2103_s13 = sphi %s2173_s13, %s3497_s13   ;;  %s2099_s12 = sphi %s2171_s12, %s3496_s12  }
   0xe   : > { %s1801_s24 = sadd.s32 4294967294, %s2139_s22   ;;  %s31_s25 = sadd.s32 1, %s2131_s20 }
   0xf   : > { %s34_s26 = sadd.s32 1, %s2135_s21  ;;  %p32_p0 = scmp.ge.s32.totalorder %s31_s25, 2 }
  0x10   : > { %s43_s27 = sadd.s32 1, %s2119_s17  ;;  %p50_p1 = scmp.ne.s32.totalorder %s2119_s17, %s2115_s16 }
  0x11   : > { %p3459_p2 = scmp.eq.s32.totalorder %s2139_s22, 0  ;;  %s3507_s25 = smov (%p32_p0, %s31_s25), 0 }
  0x12   : > { %3468 = sst [smem:[#allocation13_spill]] %s3507_s25  ;;  %s3509_s26 = smov (!%p32_p0, %s34_s26), %s2135_s21 }
  0x13   : > { %s38_s28 = ssub.s32 %s2131_s20, %s3507_s25  ;;  %p2241_p3 = por %p3459_p2, %p50_p1 }
  0x14   : > { %p36_p4 = scmp.ge.s32.totalorder %s3509_s26, 2  ;;  %p56_p5 = scmp.ne.s32.totalorder %s2115_s16, %s2111_s15 }
  0x15   : > { %p2247_p6 = scmp.eq.s32.totalorder %s1800_s23, 0  ;;  %p134_p7 = scmp.eq.s32.totalorder %s1800_s23, 3 }
  0x16   : > { %s3511_s26 = smov (%p36_p4, %s3509_s26), 0  ;;  %p140_p10 = scmp.eq.s32.totalorder %s1801_s24, 3 }
  0x17   : > { %3471 = sst [smem:[#allocation14_spill]] %s3511_s26  ;;  %p2255_p8 = por %p2247_p6, %p56_p5 }
  0x18   : > { %p2259_p9 = por %p134_p7, %p50_p1  ;;  %s2265_s6 = ssub.s32 %s2135_s21, %s3511_s26 }
  0x19   : > { %s3472_s4 = scalar_select %p2255_p8, 1, 0 }
  0x1a   : > { %s3473_s5 = scalar_select %p2259_p9, 1, 0 }
  0x1b   : > { %s40_s7 = sor.u32 %s2265_s6, %s38_s28  ;;  %p2269_p13 = por %p140_p10, %p56_p5 }
  0x1c   : > { %3474 = sst [smem:[#allocation15_spill]] %s3473_s5  ;;  %p41_p12 = scmp.eq.s32.totalorder %s40_s7, 0 }
  0x1d   : > { %s3475_s8 = scalar_select %p2269_p13, 1, 0 }
  0x1e   : > { %p3458_p0 = scmp.lt.s32.totalorder %s2139_s22, 4  ;;  %s160_s10 = sand.u32 1, %s2119_s17  }
  0x1f   : > { %s2275_s9 = scalar_select %p41_p12, %s2119_s17, %s43_s27  }
  0x20   : > { %s1805_s11 = sshll.u32 %s2131_s20, 6  ;;  %s1804_s23 = sshll.u32 %s160_s10, 8 }
  0x21   : > { %s169_s26 = sadd.s32 %s2135_s21, %s1805_s11  ;;  %s164_s15 = scalar_lea.vmem [#allocation3], %s1804_s23 }
  0x22   : > { %s1806_s25 = sshll.u32 %s169_s26, 7  ;;  %s172_s24 = sshll.u32 %s164_s15, 4  ;;  %s2285_s24 = int_to_ptr.vmem [resolvable:$true] %s172_s24 }
  0x23   : > { %s2283_s28 = scalar_lea.hbm %s3448_s0, %s1806_s25  ;;  %p2291_p1 = pnand %p3458_p0, %p2241_p3 }
  0x24   : > { %s2296_s15 = scalar_lea.sflag [#allocation4], %s160_s10  ;;  %s1953_s3 = scalar_lea.hbm %s2283_s28, 4096 }
  0x25   : > { %p1954_p5 = scmp.ne.s32.totalorder %s2283_s28, %s1953_s3  ;;  %p1955_p7 = pneg %p2291_p1 }
  0x26   : > { %s1958_s29 = scalar_lea.hbm %s3448_s0, 16384  ;;  %p1959_p3 = scmp.lt.u32.totalorder %s2283_s28, %s3448_s0 }
  0x27   : > { %p1956_p10 = pnand %p1955_p7, %p1954_p5  ;;  %p1960_p0 = scmp.lt.u32.totalorder %s1958_s29, %s1953_s3 }
  0x28   : > { %p1962_p11 = scmp.lt.u32.totalorder %s1953_s3, %s2283_s28 }
  0x29   : > { %p1957_p12 = pneg %p1956_p10  ;;  %p1961_p2 = por %p1960_p0, %p1959_p3 }
  0x2b   : > { %p1963_p4 = por %p1962_p11, %p1961_p2 }
  0x2d   : > { %p1964_p13 = pnand %p1963_p4, %p1957_p12 }
  0x2f   : > { %1967 = shalt.err (!%p1964_p13)
}
  0x30   : > { %s1968_s10 = scalar_lea.vmem %s2285_s24, 4096  ;;  %s2141_s11 = smov [#allocation3]  }
  0x31   : > { %p1969_p5 = scmp.ne.s32.totalorder %s2285_s24, %s1968_s10  ;;  %s1973_s23 = sshll.u32 %s2141_s11, 4  ;;  %s1974_s23 = int_to_ptr.vmem [resolvable:$false] %s1973_s23 }
  0x32   : > { %s1975_s25 = scalar_lea.vmem %s1974_s23, 8192  ;;  %p1976_p8 = scmp.lt.s32.totalorder %s2285_s24, %s1974_s23 }
  0x33   : > { %p1971_p10 = pnand %p1969_p5, %p1955_p7  ;;  %p1977_p0 = scmp.lt.s32.totalorder %s1975_s25, %s1968_s10 }
  0x35   : > { %p1972_p9 = pneg %p1971_p10  ;;  %p1978_p3 = por %p1977_p0, %p1976_p8 }
  0x37   : > { %p1979_p2 = pnand %p1978_p3, %p1972_p9 }
  0x39   : > { %1982 = shalt.err (!%p1979_p2)
}
  0x3a   : > { %s3462_s3 = smov 256   ;;  %s3463_s26 = smov 128  }
  0x3b   : > { %s3464_s29 = smov 8   ;;  %p206_p8 = scmp.lt.s32.totalorder %s2139_s22, 5 }
  0x3c   : > { %1837 = dma.hbm_to_vmem [thread:$0]  (!%p2291_p1), %s2283_s28, 4096, %s2285_s24, %s2296_s15, %s3462_s3, %s3463_s26, %s3464_s29  }
  0x3d   : > { %p3477_p9 = scmp.ge.s32.totalorder %s2139_s22, 1  ;;  %s69_s7 = sadd.s32 1, %s2107_s14 }
  0x3e   : > { %p76_p13 = scmp.ne.s32.totalorder %s2107_s14, %s2103_s13  ;;  %p3479_p4 = scmp.eq.s32.totalorder %s2265_s6, 0 }
  0x3f   : > { %p2330_p11 = pnand %p3477_p9, %p206_p8  ;;  %p3480_p7 = scmp.eq.s32.totalorder %s2139_s22, 0 }
  0x40   : > { %s2340_s10 = scalar_select %p3479_p4, %s2107_s14, %s69_s7  }
  0x41   : > { %p78_p12 = por %p76_p13, %p3480_p7  ;;  %p82_p5 = scmp.ne.s32.totalorder %s2103_s13, %s2099_s12 }
  0x42   : > { %s182_s11 = sand.u32 1, %s2107_s14   ;;  %s1808_s27 = sshll.u32 %s2135_s21, 7 }
  0x43   : > { %p2350_p10 = por %p82_p5, %p2247_p6  ;;  %s1807_s24 = sshll.u32 %s182_s11, 4 }
  0x44   : > { %s2357_s25 = scalar_lea.hbm %s3449_s1, %s1808_s27  ;;  %p3482_p1 = scmp.lt.s32.totalorder %s2139_s22, 4 }
  0x45   : > { %s3481_s23 = scalar_select %p2350_p10, 1, 0 }
  0x46   : > { %p2361_p0 = pnand %p3482_p1, %p78_p12  ;;  %s186_s30 = scalar_lea.vmem [#allocation6], %s1807_s24 }
  0x47   : > { %s192_s6 = sshll.u32 %s186_s30, 4  ;;  %s2367_s7 = scalar_lea.sflag [#allocation7], %s182_s11  ;;  %s2365_s6 = int_to_ptr.vmem [resolvable:$true] %s192_s6 }
  0x48   : > { %s1983_s28 = scalar_lea.hbm %s2357_s25, 256  ;;  %p1985_p3 = pneg %p2361_p0 }
  0x49   : > { %p1984_p6 = scmp.ne.s32.totalorder %s2357_s25, %s1983_s28  ;;  %s1988_s3 = scalar_lea.hbm %s3449_s1, 512 }
  0x4a   : > { %p1989_p9 = scmp.lt.u32.totalorder %s2357_s25, %s3449_s1  ;;  %p1990_p13 = scmp.lt.u32.totalorder %s1988_s3, %s1983_s28 }
  0x4b   : > { %p1986_p2 = pnand %p1985_p3, %p1984_p6  ;;  %p1992_p7 = scmp.lt.u32.totalorder %s1983_s28, %s2357_s25 }
  0x4c   : > { %p1991_p4 = por %p1990_p13, %p1989_p9 }
  0x4d   : > { %p1987_p8 = pneg %p1986_p2 }
  0x4e   : > { %p1993_p12 = por %p1992_p7, %p1991_p4 }
  0x50   : > { %p1994_p5 = pnand %p1993_p12, %p1987_p8 }
  0x52   : > { %1997 = shalt.err (!%p1994_p5)
}
  0x53   : > { %s1998_s11 = scalar_lea.vmem %s2365_s6, 256  ;;  %s2145_s24 = smov [#allocation6]  }
  0x54   : > { %p1999_p1 = scmp.ne.s32.totalorder %s2365_s6, %s1998_s11  ;;  %s2003_s30 = sshll.u32 %s2145_s24, 4  ;;  %s2004_s30 = int_to_ptr.vmem [resolvable:$false] %s2003_s30 }
  0x55   : > { %s2005_s26 = scalar_lea.vmem %s2004_s30, 512  ;;  %p2006_p10 = scmp.lt.s32.totalorder %s2365_s6, %s2004_s30 }
  0x56   : > { %p2001_p6 = pnand %p1999_p1, %p1985_p3  ;;  %p2007_p9 = scmp.lt.s32.totalorder %s2005_s26, %s1998_s11 }
  0x58   : > { %p2002_p2 = pneg %p2001_p6  ;;  %p2008_p13 = por %p2007_p9, %p2006_p10 }
  0x5a   : > { %p2009_p4 = pnand %p2008_p13, %p2002_p2 }
  0x5c   : > { %2012 = shalt.err (!%p2009_p4)
}
  0x5d   : > { %s3484_s3 = smov 8   ;;  %s3485_s29 = smov 128  }
  0x5e   : > { %s3486_s28 = smov 256   ;;  %210 = sbr.rel (%p2330_p11) target bundleno = 388 (0x184), region = 32 }
  0x5f   : > { %1840 = dma.hbm_to_vmem [thread:$0]  (!%p2361_p0), %s2357_s25, 256, %s2365_s6, %s2367_s7, %s3486_s28, %s3485_s29, %s3484_s3  }
  0x60   : > { %s2401_s27 = sand.u32 (!%p2330_p11), 1, %s2115_s16   ;;  %p3487_p10 = scmp.ne.s32.totalorder (!%p2330_p11), %s3472_s4, 0 }
  0x61   : > { %s1810_s15 = sshll.u32 (!%p2330_p11), %s2401_s27, 8  ;;  %s213_s11 = scalar_lea.sflag (!%p2330_p11), [#allocation4], %s2401_s27 }
  0x62   : > { %s2407_s12 = scalar_lea.vmem (!%p2330_p11), [#allocation3], %s1810_s15 }
  0x65   : > { %2086 = dma.done.wait (%p3487_p10), %s213_s11, 4096  }
  0x66   : > { %2088 = vsyncadd (%p3487_p10), %s213_s11, 4294963200  ;;  %s221_s5 = sand.u32 1, %s2103_s13   ;;  %p3488_p11 = scmp.ne.s32.totalorder %s3481_s23, 0 }
  0x67   : > { %s1811_s25 = sshll.u32 %s221_s5, 4  ;;  %s222_s6 = scalar_lea.sflag [#allocation7], %s221_s5 }
  0x68   : > { %s2414_s7 = scalar_lea.vmem [#allocation6], %s1811_s25 }
  0x69   : > { %2090 = dma.done.wait (%p3488_p11), %s222_s6, 256  }
  0x6a   : > { %2092 = vsyncadd (%p3488_p11), %s222_s6, 4294967040  ;;  %v2146_v0 = vmov 0.0   ;;  %v313_v1 = vld [vmem:[%s2407_s12] sm:$0xff]  ;;  %v314_v2 = vld [vmem:[%s2407_s12 + $0x8] sm:$0xff]  ;;  %vm1001_vm0 = vcmask 1046528   ;;  %p256_p0 = scmp.lt.s32.totalorder %s2127_s19, 1 }
  0x6b   : > { %262 = vst [vmem:[#allocation2 + $0x18] sm:$0xff] %v2146_v0  ;;  %259 = vst [vmem:[#allocation2] sm:$0xff] %v2146_v0  ;;  %v315_v3 = vld [vmem:[%s2407_s12 + $0x10] sm:$0xff]  ;;  %v316_v4 = vld [vmem:[%s2407_s12 + $0x18] sm:$0xff]  ;;  %vm1449_vm1 = vcmask 1045504   ;;  %s2574_s26 = scalar_lea.vmem [#allocation8], %s1810_s15 }
  0x6c   : > { %261 = vst [vmem:[#allocation2 + $0x10] sm:$0x3] %v2146_v0  ;;  %263 = vst [vmem:[#allocation2 + $0x20] sm:$0xff] %v2146_v0  ;;  %v317_v5 = vld [vmem:[%s2407_s12 + $0x20] sm:$0xff]  ;;  %v318_v6 = vld [vmem:[%s2407_s12 + $0x28] sm:$0xff]  ;;  %s257_s4 = scalar_select %p256_p0, %s2127_s19, 1 }
  0x6d   : > { %264 = vst [vmem:[#allocation2 + $0x28] sm:$0x3] %v2146_v0  ;;  %265 = vst [vmem:[#allocation2 + $0x30] sm:$0xff] %v2146_v0  ;;  %v319_v7 = vld [vmem:[%s2407_s12 + $0x30] sm:$0xff]  ;;  %v320_v8 = vld [vmem:[%s2407_s12 + $0x38] sm:$0xff]  ;;  %s1824_s3 = sshll.u32 %s2123_s18, 6 }
  0x6e   : > { %266 = vst [vmem:[#allocation2 + $0x38] sm:$0xff] %v2146_v0  ;;  %267 = vst [vmem:[#allocation2 + $0x40] sm:$0x3] %v2146_v0  ;;  %v321_v9 = vld [vmem:[%s2407_s12 + $0x40] sm:$0xff]  ;;  %v322_v10 = vld [vmem:[%s2407_s12 + $0x48] sm:$0xff]  ;;  %s2539_s30 = scalar_lea.vmem %s3450_s2, %s257_s4  ;;  %s1677_s29 = sadd.s32 %s2127_s19, %s1824_s3 }
  0x6f   : > { %268 = vst [vmem:[#allocation2 + $0x48] sm:$0xff] %v2146_v0  ;;  %269 = vst [vmem:[#allocation2 + $0x50] sm:$0xff] %v2146_v0  ;;  %v323_v11 = vld [vmem:[%s2407_s12 + $0x50] sm:$0xff]  ;;  %v324_v12 = vld [vmem:[%s2407_s12 + $0x58] sm:$0xff]  ;;  %s3489_s28 = sld [smem:[#allocation15_spill]]  ;;  %s1825_s15 = sshll.u32 %s1677_s29, 7 }
  0x70   : > { %270 = vst [vmem:[#allocation2 + $0x58] sm:$0x3] %v2146_v0  ;;  %271 = vst [vmem:[#allocation2 + $0x60] sm:$0xff] %v2146_v0  ;;  %v325_v13 = vld [vmem:[%s2407_s12 + $0x60] sm:$0xff]  ;;  %v326_v14 = vld [vmem:[%s2407_s12 + $0x68] sm:$0xff]  ;;  %s1680_s18 = sshll.u32 %s2574_s26, 4  ;;  %s3383_s18 = int_to_ptr.vmem [resolvable:$true] %s1680_s18 }
  0x71   : > { %272 = vst [vmem:[#allocation2 + $0x68] sm:$0xff] %v2146_v0  ;;  %273 = vst [vmem:[#allocation2 + $0x70] sm:$0x3] %v2146_v0  ;;  %v327_v15 = vld [vmem:[%s2407_s12 + $0x70] sm:$0xff]  ;;  %v328_v16 = vld [vmem:[%s2407_s12 + $0x78] sm:$0xff]  ;;  %s3490_s5 = sld [smem:[#allocation16_spill]] }
  0x72   : > { %274 = vst [vmem:[#allocation2 + $0x78] sm:$0xff] %v2146_v0  ;;  %275 = vst [vmem:[#allocation2 + $0x80] sm:$0xff] %v2146_v0  ;;  %v329_v17 = vld [vmem:[%s2407_s12 + $0x80] sm:$0xff]  ;;  %v330_v18 = vld [vmem:[%s2407_s12 + $0x88] sm:$0xff]  ;;  %s1666_s25 = scalar_lea.sflag [#allocation5], %s2401_s27  ;;  %s2013_s6 = scalar_lea.vmem %s3383_s18, 4096 }
  0x73   : > { %276 = vst [vmem:[#allocation2 + $0x88] sm:$0x3] %v2146_v0  ;;  %277 = vst [vmem:[#allocation2 + $0x90] sm:$0xff] %v2146_v0  ;;  %v331_v19 = vld [vmem:[%s2407_s12 + $0x90] sm:$0xff]  ;;  %v332_v20 = vld [vmem:[%s2407_s12 + $0x98] sm:$0xff]  ;;  %p2014_p3 = scmp.ne.s32.totalorder %s3383_s18, %s2013_s6 }
  0x74   : > { %278 = vst [vmem:[#allocation2 + $0x98] sm:$0xff] %v2146_v0  ;;  %279 = vst [vmem:[#allocation2 + $0xa0] sm:$0x3] %v2146_v0  ;;  %v333_v21 = vld [vmem:[%s2407_s12 + $0xa0] sm:$0xff]  ;;  %v334_v22 = vld [vmem:[%s2407_s12 + $0xa8] sm:$0xff] }
  0x75   : > { %280 = vst [vmem:[#allocation2 + $0xa8] sm:$0xff] %v2146_v0  ;;  %281 = vst [vmem:[#allocation2 + $0xb0] sm:$0xff] %v2146_v0  ;;  %v335_v23 = vld [vmem:[%s2407_s12 + $0xb0] sm:$0xff]  ;;  %v336_v24 = vld [vmem:[%s2407_s12 + $0xb8] sm:$0xff]  ;;  %p3491_p8 = scmp.ne.s32.totalorder %s3489_s28, 0 }
  0x76   : > { %282 = vst [vmem:[#allocation2 + $0xb8] sm:$0x3] %v2146_v0  ;;  %283 = vst [vmem:[#allocation2 + $0xc0] sm:$0xff] %v2146_v0  ;;  %v337_v25 = vld [vmem:[%s2407_s12 + $0xc0] sm:$0xff]  ;;  %v338_v26 = vld [vmem:[%s2407_s12 + $0xc8] sm:$0xff] }
  0x77   : > { %284 = vst [vmem:[#allocation2 + $0xc8] sm:$0xff] %v2146_v0  ;;  %285 = vst [vmem:[#allocation2 + $0xd0] sm:$0x3] %v2146_v0  ;;  %v339_v27 = vld [vmem:[%s2407_s12 + $0xd0] sm:$0xff]  ;;  %v340_v28 = vld [vmem:[%s2407_s12 + $0xd8] sm:$0xff]  ;;  %s3381_s19 = scalar_lea.hbm %s3490_s5, %s1825_s15  ;;  %p2015_p7 = pnand %p2014_p3, %p3491_p8 }
  0x78   : > { %286 = vst [vmem:[#allocation2 + $0xd8] sm:$0xff] %v2146_v0  ;;  %287 = vst [vmem:[#allocation2 + $0xe0] sm:$0xff] %v2146_v0  ;;  %v341_v29 = vld [vmem:[%s2407_s12 + $0xe0] sm:$0xff]  ;;  %v342_v30 = vld [vmem:[%s2407_s12 + $0xe8] sm:$0xff] }
  0x79   : > { %288 = vst [vmem:[#allocation2 + $0xe8] sm:$0x3] %v2146_v0  ;;  %289 = vst [vmem:[#allocation2 + $0xf0] sm:$0xff] %v2146_v0  ;;  %v343_v31 = vld [vmem:[%s2407_s12 + $0xf0] sm:$0xff]  ;;  %v344_v32 = vld [vmem:[%s2407_s12 + $0xf8] sm:$0xff]  ;;  %p2016_p12 = pneg %p2015_p7 }
  0x7a   : > { %290 = vst [vmem:[#allocation2 + $0xf8] sm:$0xff] %v2146_v0  ;;  %291 = vst [vmem:[#allocation2 + $0x100] sm:$0x3] %v2146_v0  ;;  %v2453_v33 = vld [vmem:[%s2414_s7] ss:$0 sm:$0xff] }
  0x7b   : > { %292 = vst [vmem:[#allocation2 + $0x108] sm:$0xff] %v2146_v0  ;;  %293 = vst [vmem:[#allocation2 + $0x110] sm:$0xff] %v2146_v0  ;;  %v431_v34 = vmul.f32 0.0, %v2453_v33  ;;  %v2461_v37 = vld [vmem:[%s2414_s7 + $0x3] ss:$0 sm:$0xff] }
  0x7c   : > { %294 = vst [vmem:[#allocation2 + $0x118] sm:$0x3] %v2146_v0  ;;  %295 = vst [vmem:[#allocation2 + $0x120] sm:$0xff] %v2146_v0  ;;  %v2471_v41 = vld [vmem:[%s2414_s7 + $0x6] ss:$0 sm:$0xff] }
  0x7d   : > { %296 = vst [vmem:[#allocation2 + $0x128] sm:$0xff] %v2146_v0  ;;  %297 = vst [vmem:[#allocation2 + $0x130] sm:$0x3] %v2146_v0  ;;  %v2484_v46 = vld [vmem:[%s2414_s7 + $0x1] ss:$0 sm:$0xff] }
  0x7e   : > { %298 = vst [vmem:[#allocation2 + $0x138] sm:$0xff] %v2146_v0  ;;  %299 = vst [vmem:[#allocation2 + $0x140] sm:$0xff] %v2146_v0  ;;  %v2487_v47 = vld [vmem:[%s2414_s7 + $0x4] ss:$0 sm:$0xff]  ;;  %v2490_v48 = vld [vmem:[%s2414_s7 + $0x7] ss:$0 sm:$0xff] }
  0x7f   : > { %300 = vst [vmem:[#allocation2 + $0x148] sm:$0x3] %v2146_v0  ;;  %301 = vst [vmem:[#allocation2 + $0x150] sm:$0xff] %v2146_v0  ;;  %v703_v53 = vmul.f32 0.0, %v2484_v46  ;;  %v2506_v56 = vld [vmem:[%s2414_s7 + $0x2] ss:$0 sm:$0xff] }
  0x80   : > { %302 = vst [vmem:[#allocation2 + $0x158] sm:$0xff] %v2146_v0  ;;  %303 = vst [vmem:[#allocation2 + $0x160] sm:$0x3] %v2146_v0  ;;  %v2509_v57 = vld [vmem:[%s2414_s7 + $0x5] ss:$0 sm:$0xff]  ;;  %v1151_v61 = vmul.f32 0.0, %v2506_v56 }
  0x81   : > { %304 = vst [vmem:[#allocation2 + $0x168] sm:$0xff] %v2146_v0  ;;  %305 = vst [vmem:[#allocation2 + $0x170] sm:$0xff] %v2146_v0  ;;  %v2512_v58 = vld [vmem:[%s2414_s7 + $0x8] ss:$0 sm:$0xff]  ;;  %v380_v63 = vld [vmem:[#allocation2 + $0x10] sm:$0x3] }
  0x82   : > { %306 = vst [vmem:[#allocation2 + $0x178] sm:$0x3] %v2146_v0  ;;  %307 = vst [vmem:[#allocation2 + $0x180] sm:$0xff] %v2146_v0 }
  0x83   : > { %308 = vst [vmem:[#allocation2 + $0x188] sm:$0xff] %v2146_v0  ;;  %309 = vst [vmem:[#allocation2 + $0x190] sm:$0x3] %v2146_v0 }
  0x84   : > { %312 = vst [vmem:[#allocation2 + $0x1a8] sm:$0x3] %v2146_v0  ;;  %346 = vst [vmem:[#allocation2 + $0x19] sm:$0xff] %v313_v1 }
  0x85   : > { %347 = vst [vmem:[#allocation2 + $0x21] sm:$0xff] %v314_v2  ;;  %348 = vst [vmem:[#allocation2 + $0x31] sm:$0xff] %v315_v3 }
  0x86   : > { %349 = vst [vmem:[#allocation2 + $0x39] sm:$0xff] %v316_v4  ;;  %350 = vst [vmem:[#allocation2 + $0x49] sm:$0xff] %v317_v5 }
  0x87   : > { %351 = vst [vmem:[#allocation2 + $0x51] sm:$0xff] %v318_v6  ;;  %352 = vst [vmem:[#allocation2 + $0x61] sm:$0xff] %v319_v7 }
  0x88   : > { %353 = vst [vmem:[#allocation2 + $0x69] sm:$0xff] %v320_v8  ;;  %354 = vst [vmem:[#allocation2 + $0x79] sm:$0xff] %v321_v9 }
  0x89   : > { %355 = vst [vmem:[#allocation2 + $0x81] sm:$0xff] %v322_v10  ;;  %356 = vst [vmem:[#allocation2 + $0x91] sm:$0xff] %v323_v11 }
  0x8a   : > { %357 = vst [vmem:[#allocation2 + $0x99] sm:$0xff] %v324_v12  ;;  %358 = vst [vmem:[#allocation2 + $0xa9] sm:$0xff] %v325_v13  ;;  %v705_v13 = vmul.f32 %v2484_v46, %v380_v63 }
  0x8b   : > { %359 = vst [vmem:[#allocation2 + $0xb1] sm:$0xff] %v326_v14  ;;  %360 = vst [vmem:[#allocation2 + $0xc1] sm:$0xff] %v327_v15  ;;  %v2456_v35 = vld [vmem:[#allocation2 + $0x18] sm:$0xff] }
  0x8c   : > { %361 = vst [vmem:[#allocation2 + $0xc9] sm:$0xff] %v328_v16  ;;  %362 = vst [vmem:[#allocation2 + $0xd9] sm:$0xff] %v329_v17  ;;  %v2458_v36 = vld [vmem:[#allocation2 + $0x20] sm:$0xff]  ;;  %v516_v38 = vmul.f32 %v2461_v37, %v2456_v35  ;;  %v2466_v39 = vld [vmem:[#allocation2 + $0x30] sm:$0xff]  ;;  %v433_v43 = vmul.f32 %v2453_v33, %v2456_v35  ;;  %v756_v54 = vmul.f32 %v2487_v47, %v2456_v35 }
  0x8d   : > { %363 = vst [vmem:[#allocation2 + $0xe1] sm:$0xff] %v330_v18  ;;  %364 = vst [vmem:[#allocation2 + $0xf1] sm:$0xff] %v331_v19  ;;  %v2468_v40 = vld [vmem:[#allocation2 + $0x38] sm:$0xff]  ;;  %v517_v42 = vmul.f32 %v2461_v37, %v2458_v36  ;;  %v2479_v44 = vmul.f32 %v2453_v33, %v2458_v36  ;;  %v634_v45 = vmul.f32 %v2471_v41, %v2466_v39  ;;  %v465_v4 = vld [vmem:[#allocation2 + $0x28] sm:$0x3] }
  0x8e   : > { %365 = vst [vmem:[#allocation2 + $0xf9] sm:$0xff] %v332_v20  ;;  %366 = vst [vmem:[#allocation2 + $0x109] sm:$0xff] %v333_v21  ;;  %v635_v49 = vmul.f32 %v2471_v41, %v2468_v40  ;;  %v518_v50 = vmul.f32 %v2461_v37, %v2466_v39  ;;  %v2498_v51 = vmul.f32 %v2461_v37, %v2468_v40  ;;  %v583_v5 = vld [vmem:[#allocation2 + $0x40] sm:$0x3]  ;;  %v2533_v18 = vld [vmem:[#allocation2 + $0x48] sm:$0xff] }
  0x8f   : > { %367 = vst [vmem:[#allocation2 + $0x111] sm:$0xff] %v334_v22  ;;  %368 = vst [vmem:[#allocation2 + $0x121] sm:$0xff] %v335_v23  ;;  %v548_v52 = vadd.f32 %v516_v38, %v431_v34  ;;  %v757_v55 = vmul.f32 %v2487_v47, %v2458_v36  ;;  %v857_v59 = vmul.f32 %v2490_v48, %v2466_v39  ;;  %v2546_v38 = vld [vmem:[#allocation2 + $0x50] sm:$0xff] }
  0x90   : > { %369 = vst [vmem:[#allocation2 + $0x129] sm:$0xff] %v336_v24  ;;  %370 = vst [vmem:[#allocation2 + $0x139] sm:$0xff] %v337_v25  ;;  %v858_v60 = vmul.f32 %v2490_v48, %v2468_v40  ;;  %v1204_v62 = vmul.f32 %v2509_v57, %v2456_v35  ;;  %v804_v1 = vadd.f32 %v756_v54, %v703_v53 }
  0x91   : > { %371 = vst [vmem:[#allocation2 + $0x141] sm:$0xff] %v338_v26  ;;  %372 = vst [vmem:[#allocation2 + $0x151] sm:$0xff] %v339_v27  ;;  %v666_v0 = vadd.f32 %v634_v45, %v548_v52  ;;  %v805_v2 = vadd.f32 %v757_v55, %v703_v53  ;;  %v1205_v3 = vmul.f32 %v2509_v57, %v2458_v36 }
  0x92   : > { %373 = vst [vmem:[#allocation2 + $0x159] sm:$0xff] %v340_v28  ;;  %374 = vst [vmem:[#allocation2 + $0x169] sm:$0xff] %v341_v29  ;;  %v1252_v6 = vadd.f32 %v1204_v62, %v1151_v61  ;;  %v1305_v7 = vmul.f32 %v2512_v58, %v2466_v39  ;;  %v1306_v8 = vmul.f32 %v2512_v58, %v2468_v40 }
  0x93   : > { %375 = vst [vmem:[#allocation2 + $0x171] sm:$0xff] %v342_v30  ;;  %376 = vst [vmem:[#allocation2 + $0x181] sm:$0xff] %v343_v31  ;;  %v549_v9 = vadd.f32 %v517_v42, %v431_v34  ;;  %v905_v10 = vadd.f32 %v857_v59, %v804_v1  ;;  %v906_v11 = vadd.f32 %v858_v60, %v805_v2 }
  0x94   : > { %377 = vst [vmem:[#allocation2 + $0x189] sm:$0xff] %v344_v32  ;;  %v1253_v12 = vadd.f32 %v1205_v3, %v1151_v61  ;;  %v1353_v14 = vadd.f32 %v1305_v7, %v1252_v6  ;;  %v758_v16 = vmul.f32 %v2487_v47, %v465_v4  ;;  %v859_v17 = vmul.f32 %v2490_v48, %v583_v5 }
  0x95   : > { %v667_v15 = vadd.f32 %v635_v49, %v549_v9  ;;  %v1002_v19 = vrot.slane %v905_v10, 1  ;;  %v1003_v20 = vrot.slane %v906_v11, 1  ;;  %v1153_v22 = vmul.f32 %v2506_v56, %v380_v63  ;;  %v2552_v49 = vld [vmem:[%s2539_s30] ss:$0 sm:$0xff]  ;;  %v383_v11 = vld [vmem:[#allocation2 + $0x28] sm:$0x3] }
  0x96   : > { %v1354_v21 = vadd.f32 %v1306_v8, %v1253_v12  ;;  %v1450_v23 = vrot.slane %v1353_v14, 2  ;;  %v806_v24 = vadd.f32 %v758_v16, %v705_v13  ;;  %v1206_v25 = vmul.f32 %v2509_v57, %v465_v4  ;;  %v468_v12 = vld [vmem:[#allocation2 + $0x40] sm:$0x3]  ;;  %v586_v16 = vld [vmem:[#allocation2 + $0x58] sm:$0x3] }
  0x97   : > { %v1307_v26 = vmul.f32 %v2512_v58, %v583_v5  ;;  %v1004_v27 = vsel %vm1001_vm0, %v1002_v19, %v1003_v20  ;;  %v550_v29 = vadd.f32 %v518_v50, %v433_v43  ;;  %v636_v30 = vmul.f32 %v2471_v41, %v2533_v18 }
  0x98   : > { %v1451_v28 = vrot.slane %v1354_v21, 2  ;;  %v1114_v31 = vadd.f32 %v1004_v27, %v666_v0  ;;  %v907_v32 = vadd.f32 %v859_v17, %v806_v24  ;;  %v1254_v34 = vadd.f32 %v1206_v25, %v1153_v22 }
  0x99   : > { %v706_v42 = vmul.f32 %v2484_v46, %v2456_v35  ;;  %v668_v52 = vadd.f32 %v636_v30, %v550_v29  ;;  %v707_v53 = vmul.f32 %v2484_v46, %v2458_v36  ;;  %v759_v43 = vmul.f32 %v2487_v47, %v2466_v39  ;;  %v2593_v30 = vld [vmem:[#allocation2 + $0x60] sm:$0xff] }
  0x9a   : > { %v1452_v45 = vsel %vm1449_vm1, %v1450_v23, %v1451_v28  ;;  %v1005_v54 = vrot.slane %v907_v32, 1  ;;  %v1355_v55 = vadd.f32 %v1307_v26, %v1254_v34  ;;  %v760_v59 = vmul.f32 %v2487_v47, %v2468_v40 }
  0x9b   : > { %v1562_v50 = vadd.f32 %v1452_v45, %v1114_v31  ;;  %v807_v60 = vadd.f32 %v759_v43, %v706_v42  ;;  %v860_v61 = vmul.f32 %v2490_v48, %v2533_v18  ;;  %v861_v62 = vmul.f32 %v2490_v48, %v2546_v38 }
  0x9c   : > { %v1154_v63 = vmul.f32 %v2506_v56, %v2456_v35  ;;  %v1006_v1 = vsel %vm1001_vm0, %v1003_v20, %v1005_v54  ;;  %v1453_v2 = vrot.slane %v1355_v55, 2  ;;  %v808_v3 = vadd.f32 %v760_v59, %v707_v53  ;;  %v2603_v54 = vld [vmem:[#allocation2 + $0x68] sm:$0xff] }
  0x9d   : > { %v1601_v0 = vadd.f32 %v2552_v49, %v1562_v50  ;;  %v1115_v4 = vadd.f32 %v1006_v1, %v667_v15  ;;  %v908_v5 = vadd.f32 %v860_v61, %v807_v60  ;;  %v1155_v6 = vmul.f32 %v2506_v56, %v2458_v36 }
  0x9e   : > { %v1207_v7 = vmul.f32 %v2509_v57, %v2466_v39  ;;  %v1454_v35 = vsel %vm1449_vm1, %v1451_v28, %v1453_v2  ;;  %v909_v8 = vadd.f32 %v861_v62, %v808_v3  ;;  %v1208_v9 = vmul.f32 %v2509_v57, %v2468_v40 }
  0x9f   : > { %1633 = vst [vmem:[%s2574_s26] sm:$0xff] %v1601_v0  ;;  %v1308_v10 = vmul.f32 %v2512_v58, %v2533_v18  ;;  %v1563_v36 = vadd.f32 %v1454_v35, %v1115_v4  ;;  %v1007_v13 = vrot.slane %v908_v5, 1  ;;  %v1309_v15 = vmul.f32 %v2512_v58, %v2546_v38 }
  0xa0   : > { %v1255_v14 = vadd.f32 %v1207_v7, %v1154_v63  ;;  %v1008_v17 = vrot.slane %v909_v8, 1  ;;  %v1256_v19 = vadd.f32 %v1208_v9, %v1155_v6  ;;  %v551_v20 = vadd.f32 %v2498_v51, %v2479_v44 }
  0xa1   : > { %v637_v21 = vmul.f32 %v2471_v41, %v2546_v38  ;;  %v1602_v22 = vadd.f32 %v2552_v49, %v1563_v36  ;;  %v708_v24 = vmul.f32 %v2484_v46, %v383_v11  ;;  %v761_v25 = vmul.f32 %v2487_v47, %v468_v12 }
  0xa2   : > { %v1356_v23 = vadd.f32 %v1308_v10, %v1255_v14  ;;  %v1009_v26 = vsel %vm1001_vm0, %v1007_v13, %v1008_v17  ;;  %v1357_v27 = vadd.f32 %v1309_v15, %v1256_v19  ;;  %v862_v29 = vmul.f32 %v2490_v48, %v586_v16 }
  0xa3   : > { %v669_v28 = vadd.f32 %v637_v21, %v551_v20  ;;  %1634 = vst [vmem:[%s2574_s26 + $0x8] sm:$0xff] %v1602_v22  ;;  %v1116_v44 = vadd.f32 %v1009_v26, %v668_v52  ;;  %v809_v31 = vadd.f32 %v761_v25, %v708_v24  ;;  %v1156_v32 = vmul.f32 %v2506_v56, %v383_v11  ;;  %v471_v26 = vld [vmem:[#allocation2 + $0x58] sm:$0x3] }
  0xa4   : > { %v1455_v51 = vrot.slane %v1356_v23, 2  ;;  %v1456_v34 = vrot.slane %v1357_v27, 2  ;;  %v1209_v42 = vmul.f32 %v2509_v57, %v468_v12  ;;  %v1310_v45 = vmul.f32 %v2512_v58, %v586_v16  ;;  %v589_v27 = vld [vmem:[#allocation2 + $0x70] sm:$0x3] }
  0xa5   : > { %v435_v53 = vmul.f32 %v2453_v33, %v2466_v39  ;;  %v910_v43 = vadd.f32 %v862_v29, %v809_v31  ;;  %v520_v50 = vmul.f32 %v2461_v37, %v2533_v18  ;;  %v638_v52 = vmul.f32 %v2471_v41, %v2593_v30 }
  0xa6   : > { %v709_v55 = vmul.f32 %v2484_v46, %v2466_v39  ;;  %v1457_v59 = vsel %vm1449_vm1, %v1455_v51, %v1456_v34  ;;  %v1257_v60 = vadd.f32 %v1209_v42, %v1156_v32  ;;  %v710_v61 = vmul.f32 %v2484_v46, %v2468_v40 }
  0xa7   : > { %v762_v62 = vmul.f32 %v2487_v47, %v2533_v18  ;;  %v1564_v63 = vadd.f32 %v1457_v59, %v1116_v44  ;;  %v1010_v0 = vrot.slane %v910_v43, 1  ;;  %v552_v1 = vadd.f32 %v520_v50, %v435_v53  ;;  %v2647_v50 = vld [vmem:[#allocation2 + $0x78] sm:$0xff] }
  0xa8   : > { %v763_v2 = vmul.f32 %v2487_v47, %v2546_v38  ;;  %v1358_v3 = vadd.f32 %v1310_v45, %v1257_v60  ;;  %v863_v5 = vmul.f32 %v2490_v48, %v2593_v30  ;;  %v864_v6 = vmul.f32 %v2490_v48, %v2603_v54 }
  0xa9   : > { %v810_v4 = vadd.f32 %v762_v62, %v709_v55  ;;  %v1603_v7 = vadd.f32 %v2552_v49, %v1564_v63  ;;  %v1011_v35 = vsel %vm1001_vm0, %v1008_v17, %v1010_v0  ;;  %v670_v8 = vadd.f32 %v638_v52, %v552_v1  ;;  %v386_v17 = vld [vmem:[#allocation2 + $0x40] sm:$0x3] }
  0xaa   : > { %v811_v9 = vadd.f32 %v763_v2, %v710_v61  ;;  %v1117_v10 = vadd.f32 %v1011_v35, %v669_v28  ;;  %v1458_v11 = vrot.slane %v1358_v3, 2  ;;  %v1157_v36 = vmul.f32 %v2506_v56, %v2466_v39 }
  0xab   : > { %v911_v12 = vadd.f32 %v863_v5, %v810_v4  ;;  %1635 = vst [vmem:[%s2574_s26 + $0x10] sm:$0xff] %v1603_v7  ;;  %v1158_v14 = vmul.f32 %v2506_v56, %v2468_v40  ;;  %v1210_v15 = vmul.f32 %v2509_v57, %v2533_v18  ;;  %v1211_v16 = vmul.f32 %v2509_v57, %v2546_v38  ;;  %v2658_v4 = vld [vmem:[#allocation2 + $0x80] sm:$0xff] }
  0xac   : > { %v912_v13 = vadd.f32 %v864_v6, %v811_v9  ;;  %v1459_v19 = vsel %vm1449_vm1, %v1456_v34, %v1458_v11  ;;  %v1311_v21 = vmul.f32 %v2512_v58, %v2593_v30  ;;  %v1312_v39 = vmul.f32 %v2512_v58, %v2603_v54 }
  0xad   : > { %v1012_v20 = vrot.slane %v911_v12, 1  ;;  %v1565_v22 = vadd.f32 %v1459_v19, %v1117_v10  ;;  %v1258_v24 = vadd.f32 %v1210_v15, %v1157_v36  ;;  %v1259_v25 = vadd.f32 %v1211_v16, %v1158_v14 }
  0xae   : > { %v1013_v23 = vrot.slane %v912_v13, 1  ;;  %v436_v28 = vmul.f32 %v2453_v33, %v2468_v40  ;;  %v521_v29 = vmul.f32 %v2461_v37, %v2546_v38  ;;  %v639_v44 = vmul.f32 %v2471_v41, %v2603_v54 }
  0xaf   : > { %v711_v51 = vmul.f32 %v2484_v46, %v386_v17  ;;  %v1604_v31 = vadd.f32 %v2552_v49, %v1565_v22  ;;  %v1359_v34 = vadd.f32 %v1311_v21, %v1258_v24  ;;  %v1360_v42 = vadd.f32 %v1312_v39, %v1259_v25 }
  0xb0   : > { %v1014_v32 = vsel %vm1001_vm0, %v1012_v20, %v1013_v23  ;;  %v553_v53 = vadd.f32 %v521_v29, %v436_v28  ;;  %v764_v43 = vmul.f32 %v2487_v47, %v471_v26  ;;  %v865_v40 = vmul.f32 %v2490_v48, %v589_v27 }
  0xb1   : > { %v1118_v45 = vadd.f32 %v1014_v32, %v670_v8  ;;  %1636 = vst [vmem:[%s2574_s26 + $0x18] sm:$0xff] %v1604_v31  ;;  %v1460_v52 = vrot.slane %v1359_v34, 2  ;;  %v1461_v55 = vrot.slane %v1360_v42, 2  ;;  %v1159_v59 = vmul.f32 %v2506_v56, %v386_v17  ;;  %v474_v31 = vld [vmem:[#allocation2 + $0x70] sm:$0x3] }
  0xb2   : > { %v1212_v60 = vmul.f32 %v2509_v57, %v471_v26  ;;  %v671_v61 = vadd.f32 %v639_v44, %v553_v53  ;;  %v812_v62 = vadd.f32 %v764_v43, %v711_v51  ;;  %v1313_v63 = vmul.f32 %v2512_v58, %v589_v27  ;;  %v389_v51 = vld [vmem:[#allocation2 + $0x58] sm:$0x3] }
  0xb3   : > { %v437_v0 = vmul.f32 %v2453_v33, %v2533_v18  ;;  %v1462_v1 = vsel %vm1449_vm1, %v1460_v52, %v1461_v55  ;;  %v522_v3 = vmul.f32 %v2461_v37, %v2593_v30  ;;  %v640_v5 = vmul.f32 %v2471_v41, %v2647_v50  ;;  %v592_v52 = vld [vmem:[#allocation2 + $0x88] sm:$0x3] }
  0xb4   : > { %v1260_v2 = vadd.f32 %v1212_v60, %v1159_v59  ;;  %v1566_v6 = vadd.f32 %v1462_v1, %v1118_v45  ;;  %v913_v7 = vadd.f32 %v865_v40, %v812_v62  ;;  %v712_v35 = vmul.f32 %v2484_v46, %v2533_v18 }
  0xb5   : > { %v713_v8 = vmul.f32 %v2484_v46, %v2546_v38  ;;  %v554_v10 = vadd.f32 %v522_v3, %v437_v0  ;;  %v765_v11 = vmul.f32 %v2487_v47, %v2593_v30  ;;  %v766_v12 = vmul.f32 %v2487_v47, %v2603_v54 }
  0xb6   : > { %v1361_v9 = vadd.f32 %v1313_v63, %v1260_v2  ;;  %v1605_v36 = vadd.f32 %v2552_v49, %v1566_v6  ;;  %v1015_v13 = vrot.slane %v913_v7, 1  ;;  %v866_v14 = vmul.f32 %v2490_v48, %v2647_v50  ;;  %v2700_v2 = vld [vmem:[#allocation2 + $0x90] sm:$0xff] }
  0xb7   : > { %v867_v15 = vmul.f32 %v2490_v48, %v2658_v4  ;;  %v672_v17 = vadd.f32 %v640_v5, %v554_v10  ;;  %v813_v19 = vadd.f32 %v765_v11, %v712_v35  ;;  %v814_v20 = vadd.f32 %v766_v12, %v713_v8 }
  0xb8   : > { %v1463_v16 = vrot.slane %v1361_v9, 2  ;;  %1637 = vst [vmem:[%s2574_s26 + $0x20] sm:$0xff] %v1605_v36  ;;  %v1016_v21 = vsel %vm1001_vm0, %v1013_v23, %v1015_v13  ;;  %v1160_v39 = vmul.f32 %v2506_v56, %v2533_v18  ;;  %v1161_v22 = vmul.f32 %v2506_v56, %v2546_v38  ;;  %v2711_v13 = vld [vmem:[#allocation2 + $0x98] sm:$0xff] }
  0xb9   : > { %v1213_v24 = vmul.f32 %v2509_v57, %v2593_v30  ;;  %v1119_v25 = vadd.f32 %v1016_v21, %v671_v61  ;;  %v914_v27 = vadd.f32 %v866_v14, %v813_v19  ;;  %v915_v28 = vadd.f32 %v867_v15, %v814_v20 }
  0xba   : > { %v1464_v26 = vsel %vm1449_vm1, %v1461_v55, %v1463_v16  ;;  %v1214_v29 = vmul.f32 %v2509_v57, %v2603_v54  ;;  %v1314_v23 = vmul.f32 %v2512_v58, %v2647_v50  ;;  %v1315_v18 = vmul.f32 %v2512_v58, %v2658_v4 }
  0xbb   : > { %v1261_v44 = vadd.f32 %v1213_v24, %v1160_v39  ;;  %v1567_v32 = vadd.f32 %v1464_v26, %v1119_v25  ;;  %v1017_v34 = vrot.slane %v914_v27, 1  ;;  %v1018_v42 = vrot.slane %v915_v28, 1 }
  0xbc   : > { %v438_v45 = vmul.f32 %v2453_v33, %v2546_v38  ;;  %v1262_v53 = vadd.f32 %v1214_v29, %v1161_v22  ;;  %v523_v40 = vmul.f32 %v2461_v37, %v2603_v54  ;;  %v641_v55 = vmul.f32 %v2471_v41, %v2658_v4 }
  0xbd   : > { %v1362_v43 = vadd.f32 %v1314_v23, %v1261_v44  ;;  %v1606_v59 = vadd.f32 %v2552_v49, %v1567_v32  ;;  %v1019_v60 = vsel %vm1001_vm0, %v1017_v34, %v1018_v42  ;;  %v714_v61 = vmul.f32 %v2484_v46, %v389_v51 }
  0xbe   : > { %v767_v62 = vmul.f32 %v2487_v47, %v474_v31  ;;  %v1120_v63 = vadd.f32 %v1019_v60, %v672_v17  ;;  %v1363_v0 = vadd.f32 %v1315_v18, %v1262_v53  ;;  %v555_v1 = vadd.f32 %v523_v40, %v438_v45 }
  0xbf   : > { %v1465_v38 = vrot.slane %v1362_v43, 2  ;;  %1638 = vst [vmem:[%s2574_s26 + $0x28] sm:$0xff] %v1606_v59  ;;  %v868_v5 = vmul.f32 %v2490_v48, %v592_v52  ;;  %v1162_v6 = vmul.f32 %v2506_v56, %v389_v51  ;;  %v1215_v7 = vmul.f32 %v2509_v57, %v474_v31  ;;  %v477_v59 = vld [vmem:[#allocation2 + $0x88] sm:$0x3] }
  0xc0   : > { %v815_v3 = vadd.f32 %v767_v62, %v714_v61  ;;  %v1466_v35 = vrot.slane %v1363_v0, 2  ;;  %v673_v8 = vadd.f32 %v641_v55, %v555_v1  ;;  %v1316_v9 = vmul.f32 %v2512_v58, %v592_v52  ;;  %v595_v0 = vld [vmem:[#allocation2 + $0xa0] sm:$0x3] }
  0xc1   : > { %v439_v10 = vmul.f32 %v2453_v33, %v2593_v30  ;;  %v1263_v12 = vadd.f32 %v1215_v7, %v1162_v6  ;;  %v524_v36 = vmul.f32 %v2461_v37, %v2647_v50  ;;  %v642_v14 = vmul.f32 %v2471_v41, %v2700_v2 }
  0xc2   : > { %v916_v11 = vadd.f32 %v868_v5, %v815_v3  ;;  %v1467_v15 = vsel %vm1449_vm1, %v1465_v38, %v1466_v35  ;;  %v715_v16 = vmul.f32 %v2484_v46, %v2593_v30  ;;  %v716_v17 = vmul.f32 %v2484_v46, %v2603_v54 }
  0xc3   : > { %v768_v19 = vmul.f32 %v2487_v47, %v2647_v50  ;;  %v1568_v20 = vadd.f32 %v1467_v15, %v1120_v63  ;;  %v1364_v39 = vadd.f32 %v1316_v9, %v1263_v12  ;;  %v556_v22 = vadd.f32 %v524_v36, %v439_v10  ;;  %v2757_v12 = vld [vmem:[#allocation2 + $0xa8] sm:$0xff] }
  0xc4   : > { %v1020_v21 = vrot.slane %v916_v11, 1  ;;  %v769_v24 = vmul.f32 %v2487_v47, %v2658_v4  ;;  %v869_v26 = vmul.f32 %v2490_v48, %v2700_v2  ;;  %v870_v27 = vmul.f32 %v2490_v48, %v2711_v13 }
  0xc5   : > { %v816_v25 = vadd.f32 %v768_v19, %v715_v16  ;;  %v1607_v28 = vadd.f32 %v2552_v49, %v1568_v20  ;;  %v1468_v44 = vrot.slane %v1364_v39, 2  ;;  %v674_v23 = vadd.f32 %v642_v14, %v556_v22 }
  0xc6   : > { %v1021_v29 = vsel %vm1001_vm0, %v1018_v42, %v1020_v21  ;;  %v817_v51 = vadd.f32 %v769_v24, %v716_v17  ;;  %v1163_v32 = vmul.f32 %v2506_v56, %v2593_v30  ;;  %v1164_v45 = vmul.f32 %v2506_v56, %v2603_v54  ;;  %v392_v30 = vld [vmem:[#allocation2 + $0x70] sm:$0x3] }
  0xc7   : > { %v1121_v18 = vadd.f32 %v1021_v29, %v673_v8  ;;  %v917_v31 = vadd.f32 %v869_v26, %v816_v25  ;;  %1639 = vst [vmem:[%s2574_s26 + $0x30] sm:$0xff] %v1607_v28  ;;  %v1469_v34 = vsel %vm1449_vm1, %v1466_v35, %v1468_v44  ;;  %v1216_v53 = vmul.f32 %v2509_v57, %v2647_v50  ;;  %v2766_v25 = vld [vmem:[#allocation2 + $0xb0] sm:$0xff] }
  0xc8   : > { %v1217_v42 = vmul.f32 %v2509_v57, %v2658_v4  ;;  %v918_v40 = vadd.f32 %v870_v27, %v817_v51  ;;  %v1317_v55 = vmul.f32 %v2512_v58, %v2700_v2  ;;  %v1318_v62 = vmul.f32 %v2512_v58, %v2711_v13 }
  0xc9   : > { %v1569_v43 = vadd.f32 %v1469_v34, %v1121_v18  ;;  %v1022_v52 = vrot.slane %v917_v31, 1  ;;  %v1264_v60 = vadd.f32 %v1216_v53, %v1163_v32  ;;  %v440_v63 = vmul.f32 %v2453_v33, %v2603_v54 }
  0xca   : > { %v1265_v61 = vadd.f32 %v1217_v42, %v1164_v45  ;;  %v1023_v1 = vrot.slane %v918_v40, 1  ;;  %v525_v3 = vmul.f32 %v2461_v37, %v2658_v4  ;;  %v643_v5 = vmul.f32 %v2471_v41, %v2711_v13 }
  0xcb   : > { %v1608_v38 = vadd.f32 %v2552_v49, %v1569_v43  ;;  %v1365_v6 = vadd.f32 %v1317_v55, %v1264_v60  ;;  %v717_v35 = vmul.f32 %v2484_v46, %v392_v30  ;;  %v770_v8 = vmul.f32 %v2487_v47, %v477_v59 }
  0xcc   : > { %v1366_v7 = vadd.f32 %v1318_v62, %v1265_v61  ;;  %v1024_v9 = vsel %vm1001_vm0, %v1022_v52, %v1023_v1  ;;  %v557_v54 = vadd.f32 %v525_v3, %v440_v63  ;;  %v871_v10 = vmul.f32 %v2490_v48, %v595_v0 }
  0xcd   : > { %1640 = vst [vmem:[%s2574_s26 + $0x38] sm:$0xff] %v1608_v38  ;;  %v1165_v11 = vmul.f32 %v2506_v56, %v392_v30  ;;  %v1122_v36 = vadd.f32 %v1024_v9, %v674_v23  ;;  %v1470_v14 = vrot.slane %v1365_v6, 2  ;;  %v818_v16 = vadd.f32 %v770_v8, %v717_v35  ;;  %v395_v38 = vld [vmem:[#allocation2 + $0x88] sm:$0x3]  ;;  %v480_v6 = vld [vmem:[#allocation2 + $0xa0] sm:$0x3] }
  0xce   : > { %v1471_v15 = vrot.slane %v1366_v7, 2  ;;  %v675_v17 = vadd.f32 %v643_v5, %v557_v54  ;;  %v1218_v19 = vmul.f32 %v2509_v57, %v477_v59  ;;  %v1319_v20 = vmul.f32 %v2512_v58, %v595_v0  ;;  %v598_v54 = vld [vmem:[#allocation2 + $0xb8] sm:$0x3] }
  0xcf   : > { %v441_v21 = vmul.f32 %v2453_v33, %v2647_v50  ;;  %v919_v22 = vadd.f32 %v871_v10, %v818_v16  ;;  %v526_v24 = vmul.f32 %v2461_v37, %v2700_v2  ;;  %v644_v26 = vmul.f32 %v2471_v41, %v2757_v12 }
  0xd0   : > { %v1472_v39 = vsel %vm1449_vm1, %v1470_v14, %v1471_v15  ;;  %v1266_v28 = vadd.f32 %v1218_v19, %v1165_v11  ;;  %v718_v29 = vmul.f32 %v2484_v46, %v2647_v50  ;;  %v719_v44 = vmul.f32 %v2484_v46, %v2658_v4 }
  0xd1   : > { %v1570_v27 = vadd.f32 %v1472_v39, %v1122_v36  ;;  %v1025_v23 = vrot.slane %v919_v22, 1  ;;  %v558_v18 = vadd.f32 %v526_v24, %v441_v21  ;;  %v771_v51 = vmul.f32 %v2487_v47, %v2700_v2  ;;  %v2809_v22 = vld [vmem:[#allocation2 + $0xc0] sm:$0xff] }
  0xd2   : > { %v772_v31 = vmul.f32 %v2487_v47, %v2711_v13  ;;  %v1367_v34 = vadd.f32 %v1319_v20, %v1266_v28  ;;  %v872_v45 = vmul.f32 %v2490_v48, %v2757_v12  ;;  %v873_v53 = vmul.f32 %v2490_v48, %v2766_v25 }
  0xd3   : > { %v1609_v32 = vadd.f32 %v2552_v49, %v1570_v27  ;;  %v1026_v42 = vsel %vm1001_vm0, %v1023_v1, %v1025_v23  ;;  %v676_v43 = vadd.f32 %v644_v26, %v558_v18  ;;  %v819_v40 = vadd.f32 %v771_v51, %v718_v29 }
  0xd4   : > { %v820_v52 = vadd.f32 %v772_v31, %v719_v44  ;;  %v1123_v55 = vadd.f32 %v1026_v42, %v675_v17  ;;  %v1473_v30 = vrot.slane %v1367_v34, 2  ;;  %v1166_v59 = vmul.f32 %v2506_v56, %v2647_v50  ;;  %v2819_v34 = vld [vmem:[#allocation2 + $0xc8] sm:$0xff] }
  0xd5   : > { %1641 = vst [vmem:[%s2574_s26 + $0x40] sm:$0xff] %v1609_v32  ;;  %v1167_v60 = vmul.f32 %v2506_v56, %v2658_v4  ;;  %v920_v61 = vadd.f32 %v872_v45, %v819_v40  ;;  %v1219_v63 = vmul.f32 %v2509_v57, %v2700_v2  ;;  %v1220_v0 = vmul.f32 %v2509_v57, %v2711_v13 }
  0xd6   : > { %v921_v62 = vadd.f32 %v873_v53, %v820_v52  ;;  %v1474_v1 = vsel %vm1449_vm1, %v1471_v15, %v1473_v30  ;;  %v1320_v3 = vmul.f32 %v2512_v58, %v2757_v12  ;;  %v1321_v50 = vmul.f32 %v2512_v58, %v2766_v25 }
  0xd7   : > { %v442_v5 = vmul.f32 %v2453_v33, %v2658_v4  ;;  %v1571_v7 = vadd.f32 %v1474_v1, %v1123_v55  ;;  %v1027_v35 = vrot.slane %v920_v61, 1  ;;  %v1267_v9 = vadd.f32 %v1219_v63, %v1166_v59 }
  0xd8   : > { %v1028_v8 = vrot.slane %v921_v62, 1  ;;  %v1268_v10 = vadd.f32 %v1220_v0, %v1167_v60  ;;  %v527_v11 = vmul.f32 %v2461_v37, %v2711_v13  ;;  %v645_v36 = vmul.f32 %v2471_v41, %v2766_v25 }
  0xd9   : > { %v720_v14 = vmul.f32 %v2484_v46, %v395_v38  ;;  %v1610_v15 = vadd.f32 %v2552_v49, %v1571_v7  ;;  %v1368_v16 = vadd.f32 %v1320_v3, %v1267_v9  ;;  %v773_v17 = vmul.f32 %v2487_v47, %v480_v6 }
  0xda   : > { %v1029_v4 = vsel %vm1001_vm0, %v1027_v35, %v1028_v8  ;;  %v1369_v20 = vadd.f32 %v1321_v50, %v1268_v10  ;;  %v559_v21 = vadd.f32 %v527_v11, %v442_v5  ;;  %v874_v39 = vmul.f32 %v2490_v48, %v598_v54 }
  0xdb   : > { %v1124_v19 = vadd.f32 %v1029_v4, %v676_v43  ;;  %1642 = vst [vmem:[%s2574_s26 + $0x48] sm:$0xff] %v1610_v15  ;;  %v1475_v24 = vrot.slane %v1368_v16, 2  ;;  %v821_v26 = vadd.f32 %v773_v17, %v720_v14  ;;  %v1168_v27 = vmul.f32 %v2506_v56, %v395_v38  ;;  %v483_v15 = vld [vmem:[#allocation2 + $0xb8] sm:$0x3] }
  0xdc   : > { %v1221_v28 = vmul.f32 %v2509_v57, %v480_v6  ;;  %v1476_v29 = vrot.slane %v1369_v20, 2  ;;  %v677_v44 = vadd.f32 %v645_v36, %v559_v21  ;;  %v1322_v23 = vmul.f32 %v2512_v58, %v598_v54  ;;  %v601_v20 = vld [vmem:[#allocation2 + $0xd0] sm:$0x3] }
  0xdd   : > { %v443_v18 = vmul.f32 %v2453_v33, %v2700_v2  ;;  %v922_v51 = vadd.f32 %v874_v39, %v821_v26  ;;  %v528_v32 = vmul.f32 %v2461_v37, %v2757_v12  ;;  %v646_v45 = vmul.f32 %v2471_v41, %v2809_v22 }
  0xde   : > { %v1269_v31 = vadd.f32 %v1221_v28, %v1168_v27  ;;  %v1477_v53 = vsel %vm1449_vm1, %v1475_v24, %v1476_v29  ;;  %v721_v42 = vmul.f32 %v2484_v46, %v2700_v2  ;;  %v722_v43 = vmul.f32 %v2484_v46, %v2711_v13 }
  0xdf   : > { %v774_v40 = vmul.f32 %v2487_v47, %v2757_v12  ;;  %v1572_v52 = vadd.f32 %v1477_v53, %v1124_v19  ;;  %v1030_v55 = vrot.slane %v922_v51, 1  ;;  %v560_v59 = vadd.f32 %v528_v32, %v443_v18 }
  0xe0   : > { %v1370_v30 = vadd.f32 %v1322_v23, %v1269_v31  ;;  %v775_v60 = vmul.f32 %v2487_v47, %v2766_v25  ;;  %v875_v62 = vmul.f32 %v2490_v48, %v2809_v22  ;;  %v876_v63 = vmul.f32 %v2490_v48, %v2819_v34  ;;  %v2865_v31 = vld [vmem:[#allocation2 + $0xd8] sm:$0xff] }
  0xe1   : > { %v822_v61 = vadd.f32 %v774_v40, %v721_v42  ;;  %v1611_v0 = vadd.f32 %v2552_v49, %v1572_v52  ;;  %v1031_v38 = vsel %vm1001_vm0, %v1028_v8, %v1030_v55  ;;  %v678_v3 = vadd.f32 %v646_v45, %v560_v59 }
  0xe2   : > { %v1478_v1 = vrot.slane %v1370_v30, 2  ;;  %v1125_v50 = vadd.f32 %v1031_v38, %v677_v44  ;;  %v823_v5 = vadd.f32 %v775_v60, %v722_v43  ;;  %v1169_v7 = vmul.f32 %v2506_v56, %v2700_v2  ;;  %v398_v2 = vld [vmem:[#allocation2 + $0xa0] sm:$0x3] }
  0xe3   : > { %v923_v6 = vadd.f32 %v875_v62, %v822_v61  ;;  %1643 = vst [vmem:[%s2574_s26 + $0x50] sm:$0xff] %v1611_v0  ;;  %v1170_v9 = vmul.f32 %v2506_v56, %v2711_v13  ;;  %v1222_v54 = vmul.f32 %v2509_v57, %v2757_v12  ;;  %v1223_v8 = vmul.f32 %v2509_v57, %v2766_v25  ;;  %v2874_v61 = vld [vmem:[#allocation2 + $0xe0] sm:$0xff] }
  0xe4   : > { %v1479_v35 = vsel %vm1449_vm1, %v1476_v29, %v1478_v1  ;;  %v924_v11 = vadd.f32 %v876_v63, %v823_v5  ;;  %v1323_v14 = vmul.f32 %v2512_v58, %v2809_v22  ;;  %v1324_v17 = vmul.f32 %v2512_v58, %v2819_v34 }
  0xe5   : > { %v1573_v10 = vadd.f32 %v1479_v35, %v1125_v50  ;;  %v1032_v36 = vrot.slane %v923_v6, 1  ;;  %v1270_v4 = vadd.f32 %v1222_v54, %v1169_v7  ;;  %v1271_v16 = vadd.f32 %v1223_v8, %v1170_v9 }
  0xe6   : > { %v444_v19 = vmul.f32 %v2453_v33, %v2711_v13  ;;  %v1033_v39 = vrot.slane %v924_v11, 1  ;;  %v529_v24 = vmul.f32 %v2461_v37, %v2766_v25  ;;  %v647_v26 = vmul.f32 %v2471_v41, %v2819_v34 }
  0xe7   : > { %v1612_v21 = vadd.f32 %v2552_v49, %v1573_v10  ;;  %v1371_v27 = vadd.f32 %v1323_v14, %v1270_v4  ;;  %v1372_v28 = vadd.f32 %v1324_v17, %v1271_v16  ;;  %v723_v29 = vmul.f32 %v2484_v46, %v398_v2 }
  0xe8   : > { %v776_v44 = vmul.f32 %v2487_v47, %v483_v15  ;;  %v1034_v23 = vsel %vm1001_vm0, %v1032_v36, %v1033_v39  ;;  %v561_v13 = vadd.f32 %v529_v24, %v444_v19  ;;  %v877_v18 = vmul.f32 %v2490_v48, %v601_v20 }
  0xe9   : > { %1644 = vst [vmem:[%s2574_s26 + $0x58] sm:$0xff] %v1612_v21  ;;  %v1171_v51 = vmul.f32 %v2506_v56, %v398_v2  ;;  %v1126_v32 = vadd.f32 %v1034_v23, %v678_v3  ;;  %v1480_v45 = vrot.slane %v1371_v27, 2  ;;  %v1481_v53 = vrot.slane %v1372_v28, 2  ;;  %v401_v21 = vld [vmem:[#allocation2 + $0xb8] sm:$0x3] }
  0xea   : > { %v824_v42 = vadd.f32 %v776_v44, %v723_v29  ;;  %v679_v43 = vadd.f32 %v647_v26, %v561_v13  ;;  %v1224_v40 = vmul.f32 %v2509_v57, %v483_v15  ;;  %v1325_v52 = vmul.f32 %v2512_v58, %v601_v20  ;;  %v486_v27 = vld [vmem:[#allocation2 + $0xd0] sm:$0x3]  ;;  %v604_v13 = vld [vmem:[#allocation2 + $0xe8] sm:$0x3] }
  0xeb   : > { %v445_v55 = vmul.f32 %v2453_v33, %v2757_v12  ;;  %v1482_v30 = vsel %vm1449_vm1, %v1480_v45, %v1481_v53  ;;  %v530_v60 = vmul.f32 %v2461_v37, %v2809_v22  ;;  %v648_v62 = vmul.f32 %v2471_v41, %v2865_v31 }
  0xec   : > { %v925_v59 = vadd.f32 %v877_v18, %v824_v42  ;;  %v1574_v63 = vadd.f32 %v1482_v30, %v1126_v32  ;;  %v1272_v0 = vadd.f32 %v1224_v40, %v1171_v51  ;;  %v724_v38 = vmul.f32 %v2484_v46, %v2757_v12 }
  0xed   : > { %v725_v1 = vmul.f32 %v2484_v46, %v2766_v25  ;;  %v562_v50 = vadd.f32 %v530_v60, %v445_v55  ;;  %v777_v5 = vmul.f32 %v2487_v47, %v2809_v22  ;;  %v778_v6 = vmul.f32 %v2487_v47, %v2819_v34 }
  0xee   : > { %v1035_v3 = vrot.slane %v925_v59, 1  ;;  %v1613_v7 = vadd.f32 %v2552_v49, %v1574_v63  ;;  %v1373_v35 = vadd.f32 %v1325_v52, %v1272_v0  ;;  %v878_v9 = vmul.f32 %v2490_v48, %v2865_v31  ;;  %v2917_v59 = vld [vmem:[#allocation2 + $0xf0] sm:$0xff] }
  0xef   : > { %v879_v54 = vmul.f32 %v2490_v48, %v2874_v61  ;;  %v680_v10 = vadd.f32 %v648_v62, %v562_v50  ;;  %v825_v11 = vadd.f32 %v777_v5, %v724_v38  ;;  %v826_v36 = vadd.f32 %v778_v6, %v725_v1 }
  0xf0   : > { %v1036_v8 = vsel %vm1001_vm0, %v1033_v39, %v1035_v3  ;;  %1645 = vst [vmem:[%s2574_s26 + $0x60] sm:$0xff] %v1613_v7  ;;  %v1483_v2 = vrot.slane %v1373_v35, 2  ;;  %v1172_v15 = vmul.f32 %v2506_v56, %v2757_v12  ;;  %v1173_v4 = vmul.f32 %v2506_v56, %v2766_v25  ;;  %v2927_v35 = vld [vmem:[#allocation2 + $0xf8] sm:$0xff] }
  0xf1   : > { %v1127_v14 = vadd.f32 %v1036_v8, %v679_v43  ;;  %v926_v16 = vadd.f32 %v878_v9, %v825_v11  ;;  %v927_v17 = vadd.f32 %v879_v54, %v826_v36  ;;  %v1225_v19 = vmul.f32 %v2509_v57, %v2809_v22 }
  0xf2   : > { %v1226_v20 = vmul.f32 %v2509_v57, %v2819_v34  ;;  %v1484_v39 = vsel %vm1449_vm1, %v1481_v53, %v1483_v2  ;;  %v1326_v24 = vmul.f32 %v2512_v58, %v2865_v31  ;;  %v1327_v12 = vmul.f32 %v2512_v58, %v2874_v61 }
  0xf3   : > { %v446_v26 = vmul.f32 %v2453_v33, %v2766_v25  ;;  %v1575_v28 = vadd.f32 %v1484_v39, %v1127_v14  ;;  %v1037_v29 = vrot.slane %v926_v16, 1  ;;  %v1038_v44 = vrot.slane %v927_v17, 1 }
  0xf4   : > { %v1273_v23 = vadd.f32 %v1225_v19, %v1172_v15  ;;  %v1274_v18 = vadd.f32 %v1226_v20, %v1173_v4  ;;  %v531_v51 = vmul.f32 %v2461_v37, %v2819_v34  ;;  %v649_v32 = vmul.f32 %v2471_v41, %v2874_v61 }
  0xf5   : > { %v726_v45 = vmul.f32 %v2484_v46, %v401_v21  ;;  %v1614_v53 = vadd.f32 %v2552_v49, %v1575_v28  ;;  %v1039_v25 = vsel %vm1001_vm0, %v1037_v29, %v1038_v44  ;;  %v779_v43 = vmul.f32 %v2487_v47, %v486_v27 }
  0xf6   : > { %v1374_v42 = vadd.f32 %v1326_v24, %v1273_v23  ;;  %v1128_v40 = vadd.f32 %v1039_v25, %v680_v10  ;;  %v1375_v52 = vadd.f32 %v1327_v12, %v1274_v18  ;;  %v563_v55 = vadd.f32 %v531_v51, %v446_v26  ;;  %v489_v23 = vld [vmem:[#allocation2 + $0xe8] sm:$0x3]  ;;  %v2970_v25 = vld [vmem:[%s2414_s7 + $0x3] ss:$0 sm:$0xff] }
  0xf7   : > { %v880_v30 = vmul.f32 %v2490_v48, %v604_v13  ;;  %1646 = vst [vmem:[%s2574_s26 + $0x68] sm:$0xff] %v1614_v53  ;;  %v827_v62 = vadd.f32 %v779_v43, %v726_v45  ;;  %v1174_v63 = vmul.f32 %v2506_v56, %v401_v21  ;;  %v1227_v0 = vmul.f32 %v2509_v57, %v486_v27  ;;  %v607_v45 = vld [vmem:[#allocation2 + $0x100] sm:$0x3]  ;;  %v2975_v43 = vld [vmem:[%s2414_s7 + $0x6] ss:$0 sm:$0xff] }
  0xf8   : > { %v1485_v60 = vrot.slane %v1374_v42, 2  ;;  %v1486_v38 = vrot.slane %v1375_v52, 2  ;;  %v681_v1 = vadd.f32 %v649_v32, %v563_v55  ;;  %v1328_v3 = vmul.f32 %v2512_v58, %v604_v13 }
  0xf9   : > { %v447_v50 = vmul.f32 %v2453_v33, %v2809_v22  ;;  %v928_v5 = vadd.f32 %v880_v30, %v827_v62  ;;  %v1275_v6 = vadd.f32 %v1227_v0, %v1174_v63  ;;  %v532_v7 = vmul.f32 %v2461_v37, %v2865_v31  ;;  %v2980_v30 = vld [vmem:[%s2414_s7 + $0x1] ss:$0 sm:$0xff] }
  0xfa   : > { %v650_v9 = vmul.f32 %v2471_v41, %v2917_v59  ;;  %v1487_v54 = vsel %vm1449_vm1, %v1485_v60, %v1486_v38  ;;  %v727_v8 = vmul.f32 %v2484_v46, %v2809_v22  ;;  %v728_v10 = vmul.f32 %v2484_v46, %v2819_v34  ;;  %v2984_v60 = vld [vmem:[%s2414_s7 + $0x4] ss:$0 sm:$0xff] }
  0xfb   : > { %v780_v33 = vmul.f32 %v2487_v47, %v2865_v31  ;;  %v1576_v11 = vadd.f32 %v1487_v54, %v1128_v40  ;;  %v1040_v36 = vrot.slane %v928_v5, 1  ;;  %v1376_v37 = vadd.f32 %v1328_v3, %v1275_v6  ;;  %v2994_v3 = vld [vmem:[%s2414_s7 + $0x2] ss:$0 sm:$0xff]  ;;  %v2997_v5 = vld [vmem:[#allocation2 + $0x108] sm:$0xff] }
  0xfc   : > { %v564_v14 = vadd.f32 %v532_v7, %v447_v50  ;;  %v781_v2 = vmul.f32 %v2487_v47, %v2874_v61  ;;  %v881_v15 = vmul.f32 %v2490_v48, %v2917_v59  ;;  %v882_v4 = vmul.f32 %v2490_v48, %v2927_v35 }
  0xfd   : > { %v828_v41 = vadd.f32 %v780_v33, %v727_v8  ;;  %v1615_v46 = vadd.f32 %v2552_v49, %v1576_v11  ;;  %v1041_v16 = vsel %vm1001_vm0, %v1038_v44, %v1040_v36  ;;  %v1488_v17 = vrot.slane %v1376_v37, 2  ;;  %v404_v44 = vld [vmem:[#allocation2 + $0xd0] sm:$0x3] }
  0xfe   : > { %v682_v19 = vadd.f32 %v650_v9, %v564_v14  ;;  %v1129_v20 = vadd.f32 %v1041_v16, %v681_v1  ;;  %v829_v21 = vadd.f32 %v781_v2, %v728_v10  ;;  %v1175_v47 = vmul.f32 %v2506_v56, %v2809_v22  ;;  %v3000_v10 = vld [vmem:[%s2414_s7 + $0x5] ss:$0 sm:$0xff] }
  0xff   : > { %v929_v39 = vadd.f32 %v881_v15, %v828_v41  ;;  %1647 = vst [vmem:[%s2574_s26 + $0x70] sm:$0xff] %v1615_v46  ;;  %v1489_v24 = vsel %vm1449_vm1, %v1486_v38, %v1488_v17  ;;  %v1176_v48 = vmul.f32 %v2506_v56, %v2819_v34  ;;  %v1228_v12 = vmul.f32 %v2509_v57, %v2865_v31  ;;  %v2959_v56 = vld [vmem:[%s2414_s7 + $0x8] ss:$0 sm:$0xff]  ;;  %v2990_v38 = vld [vmem:[%s2414_s7 + $0x7] ss:$0 sm:$0xff] }
 0x100   : > { %v1229_v26 = vmul.f32 %v2509_v57, %v2874_v61  ;;  %v1577_v27 = vadd.f32 %v1489_v24, %v1129_v20  ;;  %v930_v28 = vadd.f32 %v882_v4, %v829_v21  ;;  %v1329_v22 = vmul.f32 %v2512_v58, %v2917_v59  ;;  %v2964_v57 = vld [vmem:[%s2414_s7] ss:$0 sm:$0xff]  ;;  %s2147_s7 = smov [#allocation8]  }
 0x101   : > { %v1042_v29 = vrot.slane %v929_v39, 1  ;;  %v1276_v13 = vadd.f32 %v1228_v12, %v1175_v47  ;;  %v1330_v51 = vmul.f32 %v2959_v56, %v2927_v35  ;;  %v448_v32 = vmul.f32 %v2964_v57, %v2819_v34  ;;  %v3009_v41 = vld [vmem:[#allocation2 + $0x110] sm:$0xff]  ;;  %s2017_s4 = sshll.u32 %s2147_s7, 4  ;;  %s2018_s4 = int_to_ptr.vmem [resolvable:$false] %s2017_s4 }
 0x102   : > { %v1277_v18 = vadd.f32 %v1229_v26, %v1176_v48  ;;  %v1616_v58 = vadd.f32 %v2552_v49, %v1577_v27  ;;  %v1043_v53 = vrot.slane %v930_v28, 1  ;;  %v533_v42 = vmul.f32 %v2970_v25, %v2874_v61  ;;  %s2019_s23 = scalar_lea.vmem %s2018_s4, 8192  ;;  %p2020_p5 = scmp.lt.s32.totalorder %s3383_s18, %s2018_s4 }
 0x103   : > { %v651_v40 = vmul.f32 %v2975_v43, %v2927_v35  ;;  %v1377_v52 = vadd.f32 %v1329_v22, %v1276_v13  ;;  %v729_v34 = vmul.f32 %v2980_v30, %v404_v44  ;;  %v782_v62 = vmul.f32 %v2984_v60, %v489_v23  ;;  %p2021_p1 = scmp.lt.s32.totalorder %s2019_s23, %s2013_s6 }
 0x104   : > { %v1378_v55 = vadd.f32 %v1330_v51, %v1277_v18  ;;  %1648 = vst [vmem:[%s2574_s26 + $0x78] sm:$0xff] %v1616_v58  ;;  %v1044_v63 = vsel %vm1001_vm0, %v1042_v29, %v1043_v53  ;;  %v565_v0 = vadd.f32 %v533_v42, %v448_v32  ;;  %v883_v1 = vmul.f32 %v2990_v38, %v607_v45 }
 0x105   : > { %v1177_v50 = vmul.f32 %v2994_v3, %v404_v44  ;;  %v1130_v6 = vadd.f32 %v1044_v63, %v682_v19  ;;  %v1490_v7 = vrot.slane %v1377_v52, 2  ;;  %v830_v54 = vadd.f32 %v782_v62, %v729_v34  ;;  %v610_v63 = vld [vmem:[#allocation2 + $0x118] sm:$0x3]  ;;  %p2022_p6 = por %p2021_p1, %p2020_p5 }
 0x106   : > { %v1491_v9 = vrot.slane %v1378_v55, 2  ;;  %v683_v8 = vadd.f32 %v651_v40, %v565_v0  ;;  %v1230_v33 = vmul.f32 %v3000_v10, %v489_v23  ;;  %v1331_v11 = vmul.f32 %v2959_v56, %v607_v45  ;;  %v407_v45 = vld [vmem:[#allocation2 + $0xe8] sm:$0x3]  ;;  %v492_v40 = vld [vmem:[#allocation2 + $0x100] sm:$0x3] }
 0x107   : > { %v449_v36 = vmul.f32 %v2964_v57, %v2865_v31  ;;  %v931_v14 = vadd.f32 %v883_v1, %v830_v54  ;;  %v534_v2 = vmul.f32 %v2970_v25, %v2917_v59  ;;  %v652_v15 = vmul.f32 %v2975_v43, %v2997_v5  ;;  %p2023_p2 = pnand %p2022_p6, %p2016_p12 }
 0x108   : > { %v1492_v37 = vsel %vm1449_vm1, %v1490_v7, %v1491_v9  ;;  %v1278_v46 = vadd.f32 %v1230_v33, %v1177_v50  ;;  %v730_v16 = vmul.f32 %v2980_v30, %v2865_v31  ;;  %v731_v17 = vmul.f32 %v2980_v30, %v2874_v61  ;;  %v3049_v7 = vld [vmem:[%s2539_s30] ss:$0 sm:$0xff] }
 0x109   : > { %v1578_v4 = vadd.f32 %v1492_v37, %v1130_v6  ;;  %v1045_v19 = vrot.slane %v931_v14, 1  ;;  %v566_v20 = vadd.f32 %v534_v2, %v449_v36  ;;  %v783_v21 = vmul.f32 %v2984_v60, %v2917_v59  ;;  %v3055_v14 = vld [vmem:[#allocation2 + $0x120] sm:$0xff] }
 0x10a   : > { %v784_v39 = vmul.f32 %v2984_v60, %v2927_v35  ;;  %v1379_v24 = vadd.f32 %v1331_v11, %v1278_v46  ;;  %v884_v48 = vmul.f32 %v2990_v38, %v2997_v5  ;;  %v885_v12 = vmul.f32 %v2990_v38, %v3009_v41 }
 0x10b   : > { %v1617_v47 = vadd.f32 %v2552_v49, %v1578_v4  ;;  %v1046_v26 = vsel %vm1001_vm0, %v1043_v53, %v1045_v19  ;;  %v684_v27 = vadd.f32 %v652_v15, %v566_v20  ;;  %v831_v28 = vadd.f32 %v783_v21, %v730_v16 }
 0x10c   : > { %v832_v29 = vadd.f32 %v784_v39, %v731_v17  ;;  %v1131_v22 = vadd.f32 %v1046_v26, %v683_v8  ;;  %v1493_v44 = vrot.slane %v1379_v24, 2  ;;  %v1178_v23 = vmul.f32 %v2994_v3, %v2865_v31  ;;  %v3065_v24 = vld [vmem:[#allocation2 + $0x128] sm:$0xff] }
 0x10d   : > { %1649 = vst [vmem:[%s2574_s26 + $0x80] sm:$0xff] %v1617_v47  ;;  %v1179_v49 = vmul.f32 %v2994_v3, %v2874_v61  ;;  %v932_v13 = vadd.f32 %v884_v48, %v831_v28  ;;  %v1231_v51 = vmul.f32 %v3000_v10, %v2917_v59  ;;  %v1232_v32 = vmul.f32 %v3000_v10, %v2927_v35 }
 0x10e   : > { %v933_v18 = vadd.f32 %v885_v12, %v832_v29  ;;  %v1494_v58 = vsel %vm1449_vm1, %v1491_v9, %v1493_v44  ;;  %v1332_v53 = vmul.f32 %v2959_v56, %v2997_v5  ;;  %v1333_v31 = vmul.f32 %v2959_v56, %v3009_v41 }
 0x10f   : > { %v450_v42 = vmul.f32 %v2964_v57, %v2874_v61  ;;  %v1579_v52 = vadd.f32 %v1494_v58, %v1131_v22  ;;  %v1047_v55 = vrot.slane %v932_v13, 1  ;;  %v1279_v62 = vadd.f32 %v1231_v51, %v1178_v23 }
 0x110   : > { %v1048_v34 = vrot.slane %v933_v18, 1  ;;  %v1280_v0 = vadd.f32 %v1232_v32, %v1179_v49  ;;  %v535_v1 = vmul.f32 %v2970_v25, %v2927_v35  ;;  %v653_v50 = vmul.f32 %v2975_v43, %v3009_v41 }
 0x111   : > { %v732_v6 = vmul.f32 %v2980_v30, %v407_v45  ;;  %v1618_v61 = vadd.f32 %v3049_v7, %v1579_v52  ;;  %v1380_v54 = vadd.f32 %v1332_v53, %v1279_v62  ;;  %v785_v8 = vmul.f32 %v2984_v60, %v492_v40 }
 0x112   : > { %v1049_v9 = vsel %vm1001_vm0, %v1047_v55, %v1048_v34  ;;  %v1381_v11 = vadd.f32 %v1333_v31, %v1280_v0  ;;  %v567_v36 = vadd.f32 %v535_v1, %v450_v42  ;;  %v886_v37 = vmul.f32 %v2990_v38, %v610_v63 }
 0x113   : > { %v1132_v33 = vadd.f32 %v1049_v9, %v684_v27  ;;  %1650 = vst [vmem:[%s2574_s26 + $0x88] sm:$0xff] %v1618_v61  ;;  %v1495_v2 = vrot.slane %v1380_v54, 2  ;;  %v833_v15 = vadd.f32 %v785_v8, %v732_v6  ;;  %v1180_v4 = vmul.f32 %v2994_v3, %v407_v45  ;;  %v495_v61 = vld [vmem:[#allocation2 + $0x118] sm:$0x3] }
 0x114   : > { %v1233_v46 = vmul.f32 %v3000_v10, %v492_v40  ;;  %v1496_v16 = vrot.slane %v1381_v11, 2  ;;  %v685_v17 = vadd.f32 %v653_v50, %v567_v36  ;;  %v1334_v19 = vmul.f32 %v2959_v56, %v610_v63  ;;  %v613_v11 = vld [vmem:[#allocation2 + $0x130] sm:$0x3] }
 0x115   : > { %v451_v20 = vmul.f32 %v2964_v57, %v2917_v59  ;;  %v934_v21 = vadd.f32 %v886_v37, %v833_v15  ;;  %v536_v47 = vmul.f32 %v2970_v25, %v2997_v5  ;;  %v654_v48 = vmul.f32 %v2975_v43, %v3055_v14 }
 0x116   : > { %v1281_v39 = vadd.f32 %v1233_v46, %v1180_v4  ;;  %v1497_v12 = vsel %vm1449_vm1, %v1495_v2, %v1496_v16  ;;  %v733_v26 = vmul.f32 %v2980_v30, %v2917_v59  ;;  %v734_v27 = vmul.f32 %v2980_v30, %v2927_v35 }
 0x117   : > { %v786_v28 = vmul.f32 %v2984_v60, %v2997_v5  ;;  %v1580_v29 = vadd.f32 %v1497_v12, %v1132_v33  ;;  %v1050_v22 = vrot.slane %v934_v21, 1  ;;  %v568_v23 = vadd.f32 %v536_v47, %v451_v20 }
 0x118   : > { %v1382_v44 = vadd.f32 %v1334_v19, %v1281_v39  ;;  %v787_v49 = vmul.f32 %v2984_v60, %v3009_v41  ;;  %v887_v18 = vmul.f32 %v2990_v38, %v3055_v14  ;;  %v888_v51 = vmul.f32 %v2990_v38, %v3065_v24  ;;  %v3111_v39 = vld [vmem:[#allocation2 + $0x138] sm:$0xff] }
 0x119   : > { %v834_v13 = vadd.f32 %v786_v28, %v733_v26  ;;  %v1619_v32 = vadd.f32 %v3049_v7, %v1580_v29  ;;  %v1051_v45 = vsel %vm1001_vm0, %v1048_v34, %v1050_v22  ;;  %v686_v53 = vadd.f32 %v654_v48, %v568_v23 }
 0x11a   : > { %v1498_v58 = vrot.slane %v1382_v44, 2  ;;  %v1133_v31 = vadd.f32 %v1051_v45, %v685_v17  ;;  %v835_v42 = vadd.f32 %v787_v49, %v734_v27  ;;  %v1181_v52 = vmul.f32 %v2994_v3, %v2917_v59  ;;  %v410_v59 = vld [vmem:[#allocation2 + $0x100] sm:$0x3] }
 0x11b   : > { %v935_v40 = vadd.f32 %v887_v18, %v834_v13  ;;  %1651 = vst [vmem:[%s2574_s26 + $0x90] sm:$0xff] %v1619_v32  ;;  %v1182_v62 = vmul.f32 %v2994_v3, %v2927_v35  ;;  %v1234_v63 = vmul.f32 %v3000_v10, %v2997_v5  ;;  %v1235_v34 = vmul.f32 %v3000_v10, %v3009_v41  ;;  %v3120_v13 = vld [vmem:[#allocation2 + $0x140] sm:$0xff] }
 0x11c   : > { %v1499_v55 = vsel %vm1449_vm1, %v1496_v16, %v1498_v58  ;;  %v936_v1 = vadd.f32 %v888_v51, %v835_v42  ;;  %v1335_v6 = vmul.f32 %v2959_v56, %v3055_v14  ;;  %v1336_v8 = vmul.f32 %v2959_v56, %v3065_v24 }
 0x11d   : > { %v1581_v0 = vadd.f32 %v1499_v55, %v1133_v31  ;;  %v1052_v50 = vrot.slane %v935_v40, 1  ;;  %v1282_v9 = vadd.f32 %v1234_v63, %v1181_v52  ;;  %v1283_v54 = vadd.f32 %v1235_v34, %v1182_v62 }
 0x11e   : > { %v452_v33 = vmul.f32 %v2964_v57, %v2927_v35  ;;  %v1053_v37 = vrot.slane %v936_v1, 1  ;;  %v537_v2 = vmul.f32 %v2970_v25, %v3009_v41  ;;  %v655_v15 = vmul.f32 %v2975_v43, %v3065_v24 }
 0x11f   : > { %v1620_v36 = vadd.f32 %v3049_v7, %v1581_v0  ;;  %v1383_v4 = vadd.f32 %v1335_v6, %v1282_v9  ;;  %v1384_v46 = vadd.f32 %v1336_v8, %v1283_v54  ;;  %v735_v16 = vmul.f32 %v2980_v30, %v410_v59 }
 0x120   : > { %v788_v17 = vmul.f32 %v2984_v60, %v495_v61  ;;  %v1054_v19 = vsel %vm1001_vm0, %v1052_v50, %v1053_v37  ;;  %v569_v35 = vadd.f32 %v537_v2, %v452_v33  ;;  %v889_v20 = vmul.f32 %v2990_v38, %v613_v11 }
 0x121   : > { %1652 = vst [vmem:[%s2574_s26 + $0x98] sm:$0xff] %v1620_v36  ;;  %v1183_v21 = vmul.f32 %v2994_v3, %v410_v59  ;;  %v1134_v47 = vadd.f32 %v1054_v19, %v686_v53  ;;  %v1500_v48 = vrot.slane %v1383_v4, 2  ;;  %v1501_v12 = vrot.slane %v1384_v46, 2  ;;  %v413_v36 = vld [vmem:[#allocation2 + $0x118] sm:$0x3] }
 0x122   : > { %v836_v26 = vadd.f32 %v788_v17, %v735_v16  ;;  %v687_v27 = vadd.f32 %v655_v15, %v569_v35  ;;  %v1236_v28 = vmul.f32 %v3000_v10, %v495_v61  ;;  %v1337_v29 = vmul.f32 %v2959_v56, %v613_v11  ;;  %v498_v4 = vld [vmem:[#allocation2 + $0x130] sm:$0x3]  ;;  %v616_v35 = vld [vmem:[#allocation2 + $0x148] sm:$0x3] }
 0x123   : > { %v453_v22 = vmul.f32 %v2964_v57, %v2997_v5  ;;  %v1502_v44 = vsel %vm1449_vm1, %v1500_v48, %v1501_v12  ;;  %v538_v49 = vmul.f32 %v2970_v25, %v3055_v14  ;;  %v656_v18 = vmul.f32 %v2975_v43, %v3111_v39 }
 0x124   : > { %v937_v23 = vadd.f32 %v889_v20, %v836_v26  ;;  %v1582_v51 = vadd.f32 %v1502_v44, %v1134_v47  ;;  %v1284_v32 = vadd.f32 %v1236_v28, %v1183_v21  ;;  %v736_v45 = vmul.f32 %v2980_v30, %v2997_v5 }
 0x125   : > { %v737_v58 = vmul.f32 %v2980_v30, %v3009_v41  ;;  %v570_v31 = vadd.f32 %v538_v49, %v453_v22  ;;  %v789_v42 = vmul.f32 %v2984_v60, %v3055_v14  ;;  %v790_v40 = vmul.f32 %v2984_v60, %v3065_v24 }
 0x126   : > { %v1055_v53 = vrot.slane %v937_v23, 1  ;;  %v1621_v52 = vadd.f32 %v3049_v7, %v1582_v51  ;;  %v1385_v55 = vadd.f32 %v1337_v29, %v1284_v32  ;;  %v890_v62 = vmul.f32 %v2990_v38, %v3111_v39  ;;  %v3163_v23 = vld [vmem:[#allocation2 + $0x150] sm:$0xff] }
 0x127   : > { %v891_v63 = vmul.f32 %v2990_v38, %v3120_v13  ;;  %v688_v0 = vadd.f32 %v656_v18, %v570_v31  ;;  %v837_v1 = vadd.f32 %v789_v42, %v736_v45  ;;  %v838_v50 = vadd.f32 %v790_v40, %v737_v58 }
 0x128   : > { %v1056_v34 = vsel %vm1001_vm0, %v1053_v37, %v1055_v53  ;;  %1653 = vst [vmem:[%s2574_s26 + $0xa0] sm:$0xff] %v1621_v52  ;;  %v1503_v59 = vrot.slane %v1385_v55, 2  ;;  %v1184_v61 = vmul.f32 %v2994_v3, %v2997_v5  ;;  %v1185_v9 = vmul.f32 %v2994_v3, %v3009_v41  ;;  %v3173_v55 = vld [vmem:[#allocation2 + $0x158] sm:$0xff] }
 0x129   : > { %v1135_v6 = vadd.f32 %v1056_v34, %v687_v27  ;;  %v938_v54 = vadd.f32 %v890_v62, %v837_v1  ;;  %v939_v8 = vadd.f32 %v891_v63, %v838_v50  ;;  %v1237_v33 = vmul.f32 %v3000_v10, %v3055_v14 }
 0x12a   : > { %v1238_v11 = vmul.f32 %v3000_v10, %v3065_v24  ;;  %v1504_v37 = vsel %vm1449_vm1, %v1501_v12, %v1503_v59  ;;  %v1338_v2 = vmul.f32 %v2959_v56, %v3111_v39  ;;  %v1339_v5 = vmul.f32 %v2959_v56, %v3120_v13 }
 0x12b   : > { %v454_v15 = vmul.f32 %v2964_v57, %v3009_v41  ;;  %v1583_v46 = vadd.f32 %v1504_v37, %v1135_v6  ;;  %v1057_v16 = vrot.slane %v938_v54, 1  ;;  %v1058_v17 = vrot.slane %v939_v8, 1 }
 0x12c   : > { %v1285_v19 = vadd.f32 %v1237_v33, %v1184_v61  ;;  %v1286_v20 = vadd.f32 %v1238_v11, %v1185_v9  ;;  %v539_v21 = vmul.f32 %v2970_v25, %v3065_v24  ;;  %v657_v47 = vmul.f32 %v2975_v43, %v3120_v13 }
 0x12d   : > { %v738_v48 = vmul.f32 %v2980_v30, %v413_v36  ;;  %v1622_v12 = vadd.f32 %v3049_v7, %v1583_v46  ;;  %v1059_v41 = vsel %vm1001_vm0, %v1057_v16, %v1058_v17  ;;  %v791_v27 = vmul.f32 %v2984_v60, %v498_v4 }
 0x12e   : > { %v1386_v26 = vadd.f32 %v1338_v2, %v1285_v19  ;;  %v1136_v28 = vadd.f32 %v1059_v41, %v688_v0  ;;  %v1387_v29 = vadd.f32 %v1339_v5, %v1286_v20  ;;  %v571_v22 = vadd.f32 %v539_v21, %v454_v15 }
 0x12f   : > { %v892_v44 = vmul.f32 %v2990_v38, %v616_v35  ;;  %1654 = vst [vmem:[%s2574_s26 + $0xa8] sm:$0xff] %v1622_v12  ;;  %v839_v18 = vadd.f32 %v791_v27, %v738_v48  ;;  %v1186_v51 = vmul.f32 %v2994_v3, %v413_v36  ;;  %v1239_v32 = vmul.f32 %v3000_v10, %v498_v4  ;;  %v501_v12 = vld [vmem:[#allocation2 + $0x148] sm:$0x3] }
 0x130   : > { %v1505_v49 = vrot.slane %v1386_v26, 2  ;;  %v1506_v45 = vrot.slane %v1387_v29, 2  ;;  %v689_v58 = vadd.f32 %v657_v47, %v571_v22  ;;  %v1340_v53 = vmul.f32 %v2959_v56, %v616_v35  ;;  %v619_v29 = vld [vmem:[#allocation2 + $0x160] sm:$0x3] }
 0x131   : > { %v455_v31 = vmul.f32 %v2964_v57, %v3055_v14  ;;  %v940_v42 = vadd.f32 %v892_v44, %v839_v18  ;;  %v1287_v40 = vadd.f32 %v1239_v32, %v1186_v51  ;;  %v540_v52 = vmul.f32 %v2970_v25, %v3111_v39 }
 0x132   : > { %v658_v62 = vmul.f32 %v2975_v43, %v3163_v23  ;;  %v1507_v63 = vsel %vm1449_vm1, %v1505_v49, %v1506_v45  ;;  %v739_v34 = vmul.f32 %v2980_v30, %v3055_v14  ;;  %v740_v0 = vmul.f32 %v2980_v30, %v3065_v24 }
 0x133   : > { %v792_v1 = vmul.f32 %v2984_v60, %v3111_v39  ;;  %v1584_v50 = vadd.f32 %v1507_v63, %v1136_v28  ;;  %v1060_v6 = vrot.slane %v940_v42, 1  ;;  %v1388_v59 = vadd.f32 %v1340_v53, %v1287_v40  ;;  %v3219_v40 = vld [vmem:[#allocation2 + $0x168] sm:$0xff] }
 0x134   : > { %v572_v61 = vadd.f32 %v540_v52, %v455_v31  ;;  %v793_v9 = vmul.f32 %v2984_v60, %v3120_v13  ;;  %v893_v8 = vmul.f32 %v2990_v38, %v3163_v23  ;;  %v894_v33 = vmul.f32 %v2990_v38, %v3173_v55 }
 0x135   : > { %v840_v54 = vadd.f32 %v792_v1, %v739_v34  ;;  %v1623_v11 = vadd.f32 %v3049_v7, %v1584_v50  ;;  %v1061_v36 = vsel %vm1001_vm0, %v1058_v17, %v1060_v6  ;;  %v1508_v37 = vrot.slane %v1388_v59, 2 }
 0x136   : > { %v690_v2 = vadd.f32 %v658_v62, %v572_v61  ;;  %v1137_v5 = vadd.f32 %v1061_v36, %v689_v58  ;;  %v841_v15 = vadd.f32 %v793_v9, %v740_v0  ;;  %v1187_v46 = vmul.f32 %v2994_v3, %v3055_v14  ;;  %v416_v14 = vld [vmem:[#allocation2 + $0x130] sm:$0x3] }
 0x137   : > { %v941_v4 = vadd.f32 %v893_v8, %v840_v54  ;;  %1655 = vst [vmem:[%s2574_s26 + $0xb0] sm:$0xff] %v1623_v11  ;;  %v1509_v16 = vsel %vm1449_vm1, %v1506_v45, %v1508_v37  ;;  %v1188_v19 = vmul.f32 %v2994_v3, %v3065_v24  ;;  %v1240_v35 = vmul.f32 %v3000_v10, %v3111_v39  ;;  %v3228_v54 = vld [vmem:[#allocation2 + $0x170] sm:$0xff] }
 0x138   : > { %v1241_v17 = vmul.f32 %v3000_v10, %v3120_v13  ;;  %v1585_v20 = vadd.f32 %v1509_v16, %v1137_v5  ;;  %v942_v21 = vadd.f32 %v894_v33, %v841_v15  ;;  %v1341_v48 = vmul.f32 %v2959_v56, %v3163_v23 }
 0x139   : > { %v1062_v47 = vrot.slane %v941_v4, 1  ;;  %v1288_v41 = vadd.f32 %v1240_v35, %v1187_v46  ;;  %v1342_v27 = vmul.f32 %v2959_v56, %v3173_v55  ;;  %v456_v28 = vmul.f32 %v2964_v57, %v3065_v24 }
 0x13a   : > { %v1289_v26 = vadd.f32 %v1241_v17, %v1188_v19  ;;  %v1624_v22 = vadd.f32 %v3049_v7, %v1585_v20  ;;  %v1063_v44 = vrot.slane %v942_v21, 1  ;;  %v541_v49 = vmul.f32 %v2970_v25, %v3120_v13 }
 0x13b   : > { %v659_v18 = vmul.f32 %v2975_v43, %v3173_v55  ;;  %v1389_v51 = vadd.f32 %v1341_v48, %v1288_v41  ;;  %v741_v45 = vmul.f32 %v2980_v30, %v416_v14  ;;  %v794_v58 = vmul.f32 %v2984_v60, %v501_v12 }
 0x13c   : > { %v1390_v32 = vadd.f32 %v1342_v27, %v1289_v26  ;;  %1656 = vst [vmem:[%s2574_s26 + $0xb8] sm:$0xff] %v1624_v22  ;;  %v1064_v53 = vsel %vm1001_vm0, %v1062_v47, %v1063_v44  ;;  %v573_v24 = vadd.f32 %v541_v49, %v456_v28  ;;  %v895_v31 = vmul.f32 %v2990_v38, %v619_v29  ;;  %v419_v22 = vld [vmem:[#allocation2 + $0x148] sm:$0x3] }
 0x13d   : > { %v1189_v42 = vmul.f32 %v2994_v3, %v416_v14  ;;  %v1138_v52 = vadd.f32 %v1064_v53, %v690_v2  ;;  %v1510_v62 = vrot.slane %v1389_v51, 2  ;;  %v842_v34 = vadd.f32 %v794_v58, %v741_v45  ;;  %v504_v51 = vld [vmem:[#allocation2 + $0x160] sm:$0x3] }
 0x13e   : > { %v1511_v63 = vrot.slane %v1390_v32, 2  ;;  %v691_v0 = vadd.f32 %v659_v18, %v573_v24  ;;  %v1242_v1 = vmul.f32 %v3000_v10, %v501_v12  ;;  %v1343_v50 = vmul.f32 %v2959_v56, %v619_v29  ;;  %v622_v24 = vld [vmem:[#allocation2 + $0x178] sm:$0x3] }
 0x13f   : > { %v457_v6 = vmul.f32 %v2964_v57, %v3111_v39  ;;  %v943_v61 = vadd.f32 %v895_v31, %v842_v34  ;;  %v542_v9 = vmul.f32 %v2970_v25, %v3163_v23  ;;  %v660_v8 = vmul.f32 %v2975_v43, %v3219_v40 }
 0x140   : > { %v1512_v59 = vsel %vm1449_vm1, %v1510_v62, %v1511_v63  ;;  %v1290_v11 = vadd.f32 %v1242_v1, %v1189_v42  ;;  %v742_v36 = vmul.f32 %v2980_v30, %v3111_v39  ;;  %v743_v37 = vmul.f32 %v2980_v30, %v3120_v13 }
 0x141   : > { %v1586_v33 = vadd.f32 %v1512_v59, %v1138_v52  ;;  %v1065_v2 = vrot.slane %v943_v61, 1  ;;  %v574_v5 = vadd.f32 %v542_v9, %v457_v6  ;;  %v795_v15 = vmul.f32 %v2984_v60, %v3163_v23  ;;  %v3271_v61 = vld [vmem:[#allocation2 + $0x180] sm:$0xff] }
 0x142   : > { %v796_v4 = vmul.f32 %v2984_v60, %v3173_v55  ;;  %v1391_v16 = vadd.f32 %v1343_v50, %v1290_v11  ;;  %v896_v19 = vmul.f32 %v2990_v38, %v3219_v40  ;;  %v897_v35 = vmul.f32 %v2990_v38, %v3228_v54 }
 0x143   : > { %v1625_v46 = vadd.f32 %v3049_v7, %v1586_v33  ;;  %v1066_v17 = vsel %vm1001_vm0, %v1063_v44, %v1065_v2  ;;  %v692_v20 = vadd.f32 %v660_v8, %v574_v5  ;;  %v843_v21 = vadd.f32 %v795_v15, %v742_v36 }
 0x144   : > { %v844_v47 = vadd.f32 %v796_v4, %v743_v37  ;;  %v1139_v48 = vadd.f32 %v1066_v17, %v691_v0  ;;  %v1513_v14 = vrot.slane %v1391_v16, 2  ;;  %v1190_v12 = vmul.f32 %v2994_v3, %v3111_v39  ;;  %v3281_v16 = vld [vmem:[#allocation2 + $0x188] sm:$0xff] }
 0x145   : > { %1657 = vst [vmem:[%s2574_s26 + $0xc0] sm:$0xff] %v1625_v46  ;;  %v1191_v41 = vmul.f32 %v2994_v3, %v3120_v13  ;;  %v944_v26 = vadd.f32 %v896_v19, %v843_v21  ;;  %v1243_v28 = vmul.f32 %v3000_v10, %v3163_v23  ;;  %v1244_v29 = vmul.f32 %v3000_v10, %v3173_v55 }
 0x146   : > { %v945_v27 = vadd.f32 %v897_v35, %v844_v47  ;;  %v1514_v44 = vsel %vm1449_vm1, %v1511_v63, %v1513_v14  ;;  %v1344_v49 = vmul.f32 %v2959_v56, %v3219_v40  ;;  %v1345_v39 = vmul.f32 %v2959_v56, %v3228_v54 }
 0x147   : > { %v458_v18 = vmul.f32 %v2964_v57, %v3120_v13  ;;  %v1587_v32 = vadd.f32 %v1514_v44, %v1139_v48  ;;  %v1067_v45 = vrot.slane %v944_v26, 1  ;;  %v1291_v53 = vadd.f32 %v1243_v28, %v1190_v12 }
 0x148   : > { %v1068_v58 = vrot.slane %v945_v27, 1  ;;  %v1292_v31 = vadd.f32 %v1244_v29, %v1191_v41  ;;  %v543_v42 = vmul.f32 %v2970_v25, %v3173_v55  ;;  %v661_v52 = vmul.f32 %v2975_v43, %v3228_v54 }
 0x149   : > { %v744_v62 = vmul.f32 %v2980_v30, %v419_v22  ;;  %v1626_v63 = vadd.f32 %v3049_v7, %v1587_v32  ;;  %v1392_v34 = vadd.f32 %v1344_v49, %v1291_v53  ;;  %v797_v0 = vmul.f32 %v2984_v60, %v504_v51 }
 0x14a   : > { %v1069_v13 = vsel %vm1001_vm0, %v1067_v45, %v1068_v58  ;;  %v1393_v50 = vadd.f32 %v1345_v39, %v1292_v31  ;;  %v575_v6 = vadd.f32 %v543_v42, %v458_v18  ;;  %v898_v59 = vmul.f32 %v2990_v38, %v622_v24 }
 0x14b   : > { %v1140_v1 = vadd.f32 %v1069_v13, %v692_v20  ;;  %1658 = vst [vmem:[%s2574_s26 + $0xc8] sm:$0xff] %v1626_v63  ;;  %v1515_v9 = vrot.slane %v1392_v34, 2  ;;  %v845_v8 = vadd.f32 %v797_v0, %v744_v62  ;;  %v1192_v33 = vmul.f32 %v2994_v3, %v419_v22  ;;  %v507_v63 = vld [vmem:[#allocation2 + $0x178] sm:$0x3] }
 0x14c   : > { %v1245_v11 = vmul.f32 %v3000_v10, %v504_v51  ;;  %v1516_v36 = vrot.slane %v1393_v50, 2  ;;  %v693_v37 = vadd.f32 %v661_v52, %v575_v6  ;;  %v1346_v2 = vmul.f32 %v2959_v56, %v622_v24  ;;  %v625_v50 = vld [vmem:[#allocation2 + $0x190] sm:$0x3] }
 0x14d   : > { %v459_v5 = vmul.f32 %v2964_v57, %v3163_v23  ;;  %v946_v15 = vadd.f32 %v898_v59, %v845_v8  ;;  %v544_v46 = vmul.f32 %v2970_v25, %v3219_v40  ;;  %v662_v19 = vmul.f32 %v2975_v43, %v3271_v61 }
 0x14e   : > { %v1293_v4 = vadd.f32 %v1245_v11, %v1192_v33  ;;  %v1517_v35 = vsel %vm1449_vm1, %v1515_v9, %v1516_v36  ;;  %v745_v17 = vmul.f32 %v2980_v30, %v3163_v23  ;;  %v746_v20 = vmul.f32 %v2980_v30, %v3173_v55 }
 0x14f   : > { %v798_v21 = vmul.f32 %v2984_v60, %v3219_v40  ;;  %v1588_v47 = vadd.f32 %v1517_v35, %v1140_v1  ;;  %v1070_v48 = vrot.slane %v946_v15, 1  ;;  %v576_v12 = vadd.f32 %v544_v46, %v459_v5 }
 0x150   : > { %v1394_v14 = vadd.f32 %v1346_v2, %v1293_v4  ;;  %v799_v41 = vmul.f32 %v2984_v60, %v3228_v54  ;;  %v899_v27 = vmul.f32 %v2990_v38, %v3271_v61  ;;  %v900_v28 = vmul.f32 %v2990_v38, %v3281_v16 }
 0x151   : > { %v846_v26 = vadd.f32 %v798_v21, %v745_v17  ;;  %v1627_v29 = vadd.f32 %v3049_v7, %v1588_v47  ;;  %v1071_v22 = vsel %vm1001_vm0, %v1068_v58, %v1070_v48  ;;  %v694_v49 = vadd.f32 %v662_v19, %v576_v12 }
 0x152   : > { %v1518_v44 = vrot.slane %v1394_v14, 2  ;;  %v1141_v39 = vadd.f32 %v1071_v22, %v693_v37  ;;  %v847_v18 = vadd.f32 %v799_v41, %v746_v20  ;;  %v1193_v32 = vmul.f32 %v2994_v3, %v3163_v23  ;;  %v422_v23 = vld [vmem:[#allocation2 + $0x160] sm:$0x3] }
 0x153   : > { %v947_v51 = vadd.f32 %v899_v27, %v846_v26  ;;  %1659 = vst [vmem:[%s2574_s26 + $0xd0] sm:$0xff] %v1627_v29  ;;  %v1194_v53 = vmul.f32 %v2994_v3, %v3173_v55  ;;  %v1246_v24 = vmul.f32 %v3000_v10, %v3219_v40  ;;  %v1247_v58 = vmul.f32 %v3000_v10, %v3228_v54  ;;  %v1952_v22 = vld [vmem:[#allocation2] sm:$0xff] }
 0x154   : > { %v1519_v45 = vsel %vm1449_vm1, %v1516_v36, %v1518_v44  ;;  %v948_v42 = vadd.f32 %v900_v28, %v847_v18  ;;  %v1347_v62 = vmul.f32 %v2959_v56, %v3271_v61  ;;  %v1348_v0 = vmul.f32 %v2959_v56, %v3281_v16 }
 0x155   : > { %v1589_v31 = vadd.f32 %v1519_v45, %v1141_v39  ;;  %v1072_v52 = vrot.slane %v947_v51, 1  ;;  %v1294_v13 = vadd.f32 %v1246_v24, %v1193_v32  ;;  %v1295_v34 = vadd.f32 %v1247_v58, %v1194_v53 }
 0x156   : > { %v460_v1 = vmul.f32 %v2964_v57, %v3173_v55  ;;  %v1073_v59 = vrot.slane %v948_v42, 1  ;;  %v545_v9 = vmul.f32 %v2970_v25, %v3228_v54  ;;  %v663_v8 = vmul.f32 %v2975_v43, %v3281_v16 }
 0x157   : > { %v1628_v6 = vadd.f32 %v3049_v7, %v1589_v31  ;;  %v1395_v33 = vadd.f32 %v1347_v62, %v1294_v13  ;;  %v1396_v11 = vadd.f32 %v1348_v0, %v1295_v34  ;;  %v747_v36 = vmul.f32 %v2980_v30, %v422_v23  ;;  %v425_v34 = vld [vmem:[#allocation2 + $0x178] sm:$0x3]  ;;  %v510_v0 = vld [vmem:[#allocation2 + $0x190] sm:$0x3] }
 0x158   : > { %v800_v37 = vmul.f32 %v2984_v60, %v507_v63  ;;  %v1074_v2 = vsel %vm1001_vm0, %v1072_v52, %v1073_v59  ;;  %v577_v55 = vadd.f32 %v545_v9, %v460_v1  ;;  %v901_v5 = vmul.f32 %v2990_v38, %v625_v50  ;;  %v628_v9 = vld [vmem:[#allocation2 + $0x1a8] sm:$0x3] }
 0x159   : > { %1660 = vst [vmem:[%s2574_s26 + $0xd8] sm:$0xff] %v1628_v6  ;;  %v1195_v15 = vmul.f32 %v2994_v3, %v422_v23  ;;  %v1142_v4 = vadd.f32 %v1074_v2, %v694_v49  ;;  %v1520_v46 = vrot.slane %v1395_v33, 2  ;;  %v1521_v19 = vrot.slane %v1396_v11, 2 }
 0x15a   : > { %v848_v35 = vadd.f32 %v800_v37, %v747_v36  ;;  %v695_v17 = vadd.f32 %v663_v8, %v577_v55  ;;  %v1248_v20 = vmul.f32 %v3000_v10, %v507_v63  ;;  %v1349_v21 = vmul.f32 %v2959_v56, %v625_v50 }
 0x15b   : > { %v1522_v47 = vsel %vm1449_vm1, %v1520_v46, %v1521_v19  ;;  %v461_v14 = vmul.f32 %v2964_v57, %v3219_v40  ;;  %v546_v12 = vmul.f32 %v2970_v25, %v3271_v61  ;;  %v748_v27 = vmul.f32 %v2980_v30, %v3219_v40 }
 0x15c   : > { %v949_v48 = vadd.f32 %v901_v5, %v848_v35  ;;  %v1590_v41 = vadd.f32 %v1522_v47, %v1142_v4  ;;  %v1296_v26 = vadd.f32 %v1248_v20, %v1195_v15  ;;  %v749_v28 = vmul.f32 %v2980_v30, %v3228_v54 }
 0x15d   : > { %v664_v44 = vmul.f32 %v1952_v22, %v2975_v43  ;;  %v801_v49 = vmul.f32 %v2984_v60, %v3271_v61  ;;  %v802_v39 = vmul.f32 %v2984_v60, %v3281_v16  ;;  %v902_v32 = vmul.f32 %v1952_v22, %v2990_v38 }
 0x15e   : > { %v1075_v29 = vrot.slane %v949_v48, 1  ;;  %v1629_v18 = vadd.f32 %v3049_v7, %v1590_v41  ;;  %v1397_v51 = vadd.f32 %v1349_v21, %v1296_v26  ;;  %v1196_v45 = vmul.f32 %v2994_v3, %v3219_v40 }
 0x15f   : > { %v578_v24 = vadd.f32 %v546_v12, %v461_v14  ;;  %v849_v58 = vadd.f32 %v801_v49, %v748_v27  ;;  %v850_v31 = vadd.f32 %v802_v39, %v749_v28  ;;  %v1197_v52 = vmul.f32 %v2994_v3, %v3228_v54 }
 0x160   : > { %v1076_v53 = vsel %vm1001_vm0, %v1073_v59, %v1075_v29  ;;  %1661 = vst [vmem:[%s2574_s26 + $0xe0] sm:$0xff] %v1629_v18  ;;  %v1523_v42 = vrot.slane %v1397_v51, 2  ;;  %v1249_v62 = vmul.f32 %v3000_v10, %v3271_v61  ;;  %v1250_v13 = vmul.f32 %v3000_v10, %v3281_v16 }
 0x161   : > { %v1143_v43 = vadd.f32 %v1076_v53, %v695_v17  ;;  %v950_v23 = vadd.f32 %v902_v32, %v849_v58  ;;  %v951_v63 = vadd.f32 %v902_v32, %v850_v31  ;;  %v1350_v40 = vmul.f32 %v1952_v22, %v2959_v56 }
 0x162   : > { %v1524_v1 = vsel %vm1449_vm1, %v1521_v19, %v1523_v42  ;;  %v1297_v50 = vadd.f32 %v1249_v62, %v1196_v45  ;;  %v462_v6 = vmul.f32 %v2964_v57, %v3228_v54  ;;  %v547_v59 = vmul.f32 %v2970_v25, %v3281_v16 }
 0x163   : > { %v1591_v61 = vadd.f32 %v1524_v1, %v1143_v43  ;;  %v1077_v8 = vrot.slane %v950_v23, 1  ;;  %v1078_v33 = vrot.slane %v951_v63, 1  ;;  %v1298_v11 = vadd.f32 %v1250_v13, %v1197_v52 }
 0x164   : > { %v696_v36 = vadd.f32 %v664_v44, %v578_v24  ;;  %v1398_v37 = vadd.f32 %v1350_v40, %v1297_v50  ;;  %v750_v2 = vmul.f32 %v2980_v30, %v425_v34  ;;  %v803_v55 = vmul.f32 %v2984_v60, %v510_v0 }
 0x165   : > { %v1630_v5 = vadd.f32 %v3049_v7, %v1591_v61  ;;  %v1079_v57 = vsel %vm1001_vm0, %v1077_v8, %v1078_v33  ;;  %v1399_v54 = vadd.f32 %v1350_v40, %v1298_v11  ;;  %v904_v25 = vmul.f32 %v2990_v38, %v628_v9 }
 0x166   : > { %v1144_v16 = vadd.f32 %v1079_v57, %v696_v36  ;;  %v1525_v15 = vrot.slane %v1398_v37, 2  ;;  %v579_v4 = vadd.f32 %v547_v59, %v462_v6  ;;  %v851_v46 = vadd.f32 %v803_v55, %v750_v2 }
 0x167   : > { %1662 = vst [vmem:[%s2574_s26 + $0xe8] sm:$0xff] %v1630_v5  ;;  %v1526_v19 = vrot.slane %v1399_v54, 2  ;;  %v1198_v35 = vmul.f32 %v2994_v3, %v425_v34  ;;  %v1251_v30 = vmul.f32 %v3000_v10, %v510_v0  ;;  %v1352_v60 = vmul.f32 %v2959_v56, %v628_v9 }
 0x168   : > { %v952_v17 = vadd.f32 %v904_v25, %v851_v46  ;;  %v697_v48 = vadd.f32 %v664_v44, %v579_v4 }
 0x169   : > { %v1527_v20 = vsel %vm1449_vm1, %v1525_v15, %v1526_v19  ;;  %v1299_v38 = vadd.f32 %v1251_v30, %v1198_v35 }
 0x16a   : > { %v1592_v21 = vadd.f32 %v1527_v20, %v1144_v16  ;;  %v1080_v47 = vrot.slane %v952_v17, 1 }
 0x16b   : > { %v1400_v14 = vadd.f32 %v1352_v60, %v1299_v38 }
 0x16c   : > { %v1631_v3 = vadd.f32 %v3049_v7, %v1592_v21  ;;  %v1081_v10 = vsel %vm1001_vm0, %v1078_v33, %v1080_v47 }
 0x16d   : > { %v1145_v12 = vadd.f32 %v1081_v10, %v697_v48  ;;  %v1528_v56 = vrot.slane %v1400_v14, 2 }
 0x16e   : > { %1663 = vst [vmem:[%s2574_s26 + $0xf0] sm:$0xff] %v1631_v3 }
 0x16f   : > { %v1529_v41 = vsel %vm1449_vm1, %v1526_v19, %v1528_v56 }
 0x170   : > { %v1593_v26 = vadd.f32 %v1529_v41, %v1145_v12 }
 0x172   : > { %v1632_v27 = vadd.f32 %v3049_v7, %v1593_v26 }
 0x174   : > { %1664 = vst [vmem:[%s2574_s26 + $0xf8] sm:$0xff] %v1632_v27 }
 0x175   : > { %2026 = shalt.err (!%p2023_p2)
}
 0x176   : > { %s2027_s24 = scalar_lea.hbm %s3381_s19, 4096  ;;  %s2031_s3 = scalar_lea.hbm %s3490_s5, 16384 }
 0x177   : > { %p2028_p9 = scmp.ne.s32.totalorder %s3381_s19, %s2027_s24  ;;  %p2032_p10 = scmp.lt.u32.totalorder %s3381_s19, %s3490_s5 }
 0x178   : > { %p2033_p11 = scmp.lt.u32.totalorder %s2031_s3, %s2027_s24  ;;  %p2035_p3 = scmp.lt.u32.totalorder %s2027_s24, %s3381_s19 }
 0x179   : > { %p2029_p13 = pnand %p2028_p9, %p3491_p8 }
 0x17a   : > { %p2034_p0 = por %p2033_p11, %p2032_p10 }
 0x17b   : > { %p2030_p4 = pneg %p2029_p13 }
 0x17c   : > { %p2036_p7 = por %p2035_p3, %p2034_p0 }
 0x17e   : > { %p2037_p12 = pnand %p2036_p7, %p2030_p4 }
 0x180   : > { %2040 = shalt.err (!%p2037_p12)
}
 0x181   : > { %s2148_s11 = smov 128   ;;  %s2149_s12 = smov 256  }
 0x182   : > { %s2150_s6 = smov 8  }
 0x183   : > { %1832 = dma.vmem_to_hbm [thread:$0]  (%p3491_p8), %s3383_s18, 4096, %s3381_s19, %s1666_s25, %s2148_s11, %s2149_s12, %s2150_s6  }
 0x184 PF: > { %s3492_s7 = sld [smem:[#allocation12_spill]]  ;;  %p1846_p5 = scmp.ge.s32.totalorder %s2139_s22, 2 }
 0x185   : > { %p3493_p1 = scmp.ne.s32.totalorder %s3475_s8, 0 }
 0x187   : > { %p1842_p6 = pnand %p1846_p5, %p3493_p1 }
 0x18a   : > { %s1695_s4 = sand.u32 1, %s3492_s7  }
 0x18b   : > { %s1696_s23 = scalar_lea.sflag [#allocation5], %s1695_s4 }
 0x18c   : > { %2094 = dma.done.wait (!%p1842_p6), %s1696_s23, 4096  }
 0x18d   : > { %2096 = vsyncadd (!%p1842_p6), %s1696_s23, 4294963200  ;;  %s22_s22 = sadd.s32 1, %s2139_s22   ;;  %s3494_s27 = sld [smem:[#allocation13_spill]] }
 0x18e   : > { %p19_p2 = scmp.ge.s32.totalorder %s22_s22, 6   ;;  %s3495_s28 = sld [smem:[#allocation14_spill]] }
 0x18f   : > { %s3496_s12 = smov %s2103_s13  ;;  %s3497_s13 = smov %s2107_s14 }
 0x190   : > { %s3498_s14 = smov %s2340_s10  ;;  %s3499_s15 = smov %s2115_s16 }
 0x191   : > { %s3500_s16 = smov %s2119_s17  ;;  %s3501_s17 = smov %s2275_s9 }
 0x192   : > { %s3502_s18 = smov %s2131_s20  ;;  %s3503_s19 = smov %s2135_s21 }
 0x193   : > { %s3504_s20 = smov %s3494_s27  ;;  %21 = sbr.rel (!%p19_p2) target bundleno = 13 (0xd), region = 95 }
 0x194   : > { %s3505_s21 = smov %s3495_s28 }
 0x19a   :  { %1701 = vsyncpa [#allocation4], 1 }
 0x19b   :  { %1703 = vsyncpa [#allocation4 + $0x1], 1 }
 0x19c   :  { %1704 = vsyncpa [#allocation7], 1 }
 0x19d   :  { %1706 = vsyncpa [#allocation7 + $0x1], 1 }
 0x19e   :  { %1707 = vsyncpa [#allocation5], 1 }
 0x19f   :  { %1709 = vsyncpa [#allocation5 + $0x1], 1 }

</bundles_post_ra>
